<compile_context>
chip_gen: v7x
topology: tpu7x:2x2x1
jax: 0.10.0
libtpu: 0.0.40
codegen_flags: <defaults>
</compile_context>

<pallas_src>
import math

import jax
import jax.numpy as jnp
from jax.experimental import pallas as pl
from jax.experimental.pallas import tpu as pltpu


def _round_up(x, m):
    return ((x + m - 1) // m) * m


def _cdiv(a, b):
    return (a + b - 1) // b


def _mlp_kernel(x_ref, w1_ref, b1_ref, w2_ref, b2_ref, w3_ref, b3_ref, o_ref):
    # Fused 3-layer MLP: bf16 MXU operands, f32 accumulation.
    x = x_ref[...].astype(jnp.bfloat16)                                # in-kernel cast
    h1 = jnp.dot(x, w1_ref[...], preferred_element_type=jnp.float32) + b1_ref[...]
    h1 = jnp.maximum(h1, 0.0).astype(jnp.bfloat16)
    h2 = jnp.dot(h1, w2_ref[...], preferred_element_type=jnp.float32) + b2_ref[...]
    h2 = jnp.maximum(h2, 0.0).astype(jnp.bfloat16)
    # dropout(p=0.1) is identity at inference time.
    logits = jnp.dot(h2, w3_ref[...], preferred_element_type=jnp.float32) + b3_ref[...]
    o_ref[...] = logits.astype(o_ref.dtype)            # lane-dense (block_b, 128) store


def _pick_block_b(B):
    """Rows per grid step.

    * 16-row aligned so bf16 casts of x/h1/h2 fill packed sublanes (v5e).
    * capped at 512 rows/step: f32 x-tile + bf16 weights + f32 output stay
      ~6 MiB double-buffered, well inside every generation's scoped VMEM.
    * once the batch supports >=2 steps, keep the step count even so the
      "parallel" batch axis balances across v7x's two TensorCores
      (harmless extra ~0.35 us/step on single-TC v5e/v6e).
    """
    Bp = _round_up(B, 16)
    if Bp <= 256:
        return Bp                                   # single tile; nothing to balance
    n_steps = max(2, _cdiv(Bp, 512))
    if n_steps % 2:
        n_steps += 1
    return _round_up(_cdiv(Bp, n_steps), 16)


def prepare_params(params):
    """One-time prep (call once, outside the per-forward path):
    cast weights to bf16 and zero-pad W3/b3 to a lane-dense 128-wide class
    axis so the kernel's final matmul / store are full-lane."""
    w1, b1 = params["W1"], params["b1"]
    w2, b2 = params["W2"], params["b2"]
    w3, b3 = params["W3"], params["b3"]
    n_class = w3.shape[1]
    n_pad = _round_up(max(n_class, 128), 128)
    return {
        "W1": w1.astype(jnp.bfloat16),
        "b1": jnp.reshape(b1, (1, -1)).astype(jnp.float32),
        "W2": w2.astype(jnp.bfloat16),
        "b2": jnp.reshape(b2, (1, -1)).astype(jnp.float32),
        "W3": jnp.pad(w3, ((0, 0), (0, n_pad - n_class))).astype(jnp.bfloat16),
        "b3": jnp.pad(jnp.reshape(b3, (1, -1)),
                      ((0, 0), (0, n_pad - n_class))).astype(jnp.float32),
    }


def classifier_forward(x, params, n_class, labels=None, block_b=None):
    """x: (B, dim_in) float32 (unpadded).  params: output of prepare_params()."""
    B, dim_in = x.shape
    w1, b1 = params["W1"], params["b1"]
    w2, b2 = params["W2"], params["b2"]
    w3, b3 = params["W3"], params["b3"]
    d1, d2, n_pad = w1.shape[1], w2.shape[1], w3.shape[1]
    assert w1.shape[0] == dim_in, "params do not match x's feature dim"
    assert w1.dtype == jnp.bfloat16, "pass params through prepare_params() first"

    if block_b is None:
        block_b = _pick_block_b(B)
    block_b = max(16, _round_up(block_b, 16))
    grid = (_cdiv(B, block_b),)

    matmul_flops = 2 * (dim_in * d1 + d1 * d2 + d2 * n_pad)
    cost = pl.CostEstimate(
        flops=B * matmul_flops,
        transcendentals=0,
        bytes_accessed=(B * dim_in * 4                              # x (f32)
                        + B * n_pad * 4                             # logits out (f32)
                        + (dim_in * d1 + d1 * d2 + d2 * n_pad) * 2  # bf16 weights
                        + (d1 + d2 + n_pad) * 4),                   # f32 biases
    )

    logits_pad = pl.pallas_call(
        _mlp_kernel,
        out_shape=jax.ShapeDtypeStruct((B, n_pad), jnp.float32),
        grid_spec=pltpu.PrefetchScalarGridSpec(
            num_scalar_prefetch=0,
            grid=grid,
            in_specs=[
                # x: unpadded f32; last dim equals the full K extent -> legal block.
                pl.BlockSpec((block_b, dim_in), lambda i: (i, 0)),
                pl.BlockSpec((dim_in, d1), lambda i: (0, 0)),   # W1 (bf16)
                pl.BlockSpec((1, d1), lambda i: (0, 0)),        # b1 (f32)
                pl.BlockSpec((d1, d2), lambda i: (0, 0)),       # W2 (bf16)
                pl.BlockSpec((1, d2), lambda i: (0, 0)),        # b2 (f32)
                pl.BlockSpec((d2, n_pad), lambda i: (0, 0)),    # W3 (bf16, lane-padded)
                pl.BlockSpec((1, n_pad), lambda i: (0, 0)),     # b3 (f32, lane-padded)
            ],
            out_specs=pl.BlockSpec((block_b, n_pad), lambda i: (i, 0)),
        ),
        compiler_params=pltpu.CompilerParams(
            dimension_semantics=("parallel",),
        ),
        cost_estimate=cost,
    )(x, w1, b1, w2, b2, w3, b3)

    logits = logits_pad[:, :n_class]

    if labels is not None:
        # nn.CrossEntropyLoss (mean reduction) — tiny (B, n_class) glue in JAX.
        logp = jax.nn.log_softmax(logits, axis=-1)
        loss = -jnp.mean(jnp.take_along_axis(logp, labels[:, None], axis=-1))
        return loss, logits
    return logits


def _init_linear(key, fan_in, fan_out):
    """PyTorch nn.Linear default init: U(-1/sqrt(fan_in), 1/sqrt(fan_in))."""
    kw, kb = jax.random.split(key)
    bound = 1.0 / math.sqrt(fan_in)
    w = jax.random.uniform(kw, (fan_in, fan_out), jnp.float32, -bound, bound)
    b = jax.random.uniform(kb, (1, fan_out), jnp.float32, -bound, bound)
    return w, b


def init_params(key, dim_h=768, n_class=5, use_network=False, use_count=False):
    dim_in = dim_h + (2 if use_network else 0) + (6 if use_count else 0)
    k1, k2, k3 = jax.random.split(key, 3)
    w1, b1 = _init_linear(k1, dim_in, 512)
    w2, b2 = _init_linear(k2, 512, 256)
    w3, b3 = _init_linear(k3, 256, n_class)
    return {"W1": w1, "b1": b1, "W2": w2, "b2": b2, "W3": w3, "b3": b3}


if __name__ == "__main__":
    key = jax.random.PRNGKey(0)
    k_param, k_x, k_lbl = jax.random.split(key, 3)

    # Small demo shapes: dim_in = 768 + 2 + 6 = 776 (non-128-multiple K),
    # batch = 6 (ragged last block), n_class = 5 (lane padding to 128).
    dim_h, n_class, batch = 768, 5, 6
    raw_params = init_params(k_param, dim_h=dim_h, n_class=n_class,
                             use_network=True, use_count=True)
    params = jax.tree_util.tree_map(jnp.asarray, prepare_params(raw_params))
    dim_in = raw_params["W1"].shape[0]
    x = jax.random.normal(k_x, (batch, dim_in), jnp.float32)
    labels = jax.random.randint(k_lbl, (batch,), 0, n_class)

    fwd = jax.jit(classifier_forward, static_argnums=(2,))

    # No-labels path
    logits = jax.block_until_ready(fwd(x, params, n_class))

    # Labels path -> (loss, logits)
    loss, logits2 = fwd(x, params, n_class, labels)
    loss = jax.block_until_ready(loss)

    # Pure-JAX reference with the same bf16-operand / f32-accumulation numerics.
    def ref(x, p):
        bf = jnp.bfloat16
        h = jnp.maximum(jnp.dot(x.astype(bf), p["W1"].astype(bf),
                                preferred_element_type=jnp.float32) + p["b1"], 0.0)
        h = jnp.maximum(jnp.dot(h.astype(bf), p["W2"].astype(bf),
                                preferred_element_type=jnp.float32) + p["b2"], 0.0)
        return jnp.dot(h.astype(bf), p["W3"].astype(bf),
                       preferred_element_type=jnp.float32) + p["b3"]

    ref_logits = ref(x, raw_params)
    assert logits.shape == (batch, n_class)
    assert jnp.allclose(logits, ref_logits, atol=2e-2, rtol=2e-2), \
        float(jnp.max(jnp.abs(logits - ref_logits)))
    assert jnp.allclose(logits, logits2)

    ref_logp = jax.nn.log_softmax(ref_logits, axis=-1)
    ref_loss = -jnp.mean(jnp.take_along_axis(ref_logp, labels[:, None], axis=-1))
    assert loss.shape == ()
    assert jnp.allclose(loss, ref_loss, atol=2e-2, rtol=2e-2)

    print("KERNEL_OK")
</pallas_src>

<mosaic_0001>
module attributes {stable_mosaic.version = 11 : i64} {
  func.func @_mlp_kernel(%arg0: i32, %arg1: memref<16x776xf32, #tpu.memory_space<vmem>>, %arg2: memref<776x512xbf16, #tpu.memory_space<vmem>>, %arg3: memref<1x512xf32, #tpu.memory_space<vmem>>, %arg4: memref<512x256xbf16, #tpu.memory_space<vmem>>, %arg5: memref<1x256xf32, #tpu.memory_space<vmem>>, %arg6: memref<256x128xbf16, #tpu.memory_space<vmem>>, %arg7: memref<1x128xf32, #tpu.memory_space<vmem>>, %arg8: memref<16x128xf32, #tpu.memory_space<vmem>>) attributes {dimension_semantics = [#tpu.dimension_semantics<parallel>], iteration_bounds = array<i64: 1>, scalar_prefetch = 0 : i64, scratch_operands = 0 : i64, tpu.core_type = #tpu.core_type<tc>, window_params = [{transform_indices = @transform_0, window_bounds = array<i64: 16, 776>}, {pipeline_mode = #tpu.pipeline_mode<synchronous>, transform_indices = @transform_1, window_bounds = array<i64: 776, 512>}, {pipeline_mode = #tpu.pipeline_mode<synchronous>, transform_indices = @transform_2, window_bounds = array<i64: 1, 512>}, {pipeline_mode = #tpu.pipeline_mode<synchronous>, transform_indices = @transform_3, window_bounds = array<i64: 512, 256>}, {pipeline_mode = #tpu.pipeline_mode<synchronous>, transform_indices = @transform_4, window_bounds = array<i64: 1, 256>}, {pipeline_mode = #tpu.pipeline_mode<synchronous>, transform_indices = @transform_5, window_bounds = array<i64: 256, 128>}, {pipeline_mode = #tpu.pipeline_mode<synchronous>, transform_indices = @transform_6, window_bounds = array<i64: 1, 128>}, {transform_indices = @transform_7, window_bounds = array<i64: 16, 128>}]} {
    %c0 = arith.constant 0 : index
    %c0_0 = arith.constant 0 : index
    %0 = vector.load %arg1[%c0, %c0_0] : memref<16x776xf32, #tpu.memory_space<vmem>>, vector<16x776xf32>
    %1 = arith.truncf %0 : vector<16x776xf32> to vector<16x776xbf16>
    %c0_1 = arith.constant 0 : index
    %c0_2 = arith.constant 0 : index
    %2 = vector.load %arg2[%c0_1, %c0_2] : memref<776x512xbf16, #tpu.memory_space<vmem>>, vector<776x512xbf16>
    %cst = arith.constant dense<0.000000e+00> : vector<16x512xf32>
    %3 = tpu.matmul %1, %2, %cst {dimension_numbers = #tpu.dot_dimension_numbers<[1], [0], [0], [1], [0, 0, 1, 1], [], []>} : vector<16x776xbf16>, vector<776x512xbf16>, vector<16x512xf32> -> vector<16x512xf32>
    %c0_3 = arith.constant 0 : index
    %c0_4 = arith.constant 0 : index
    %4 = vector.load %arg3[%c0_3, %c0_4] : memref<1x512xf32, #tpu.memory_space<vmem>>, vector<1x512xf32>
    %5 = vector.broadcast %4 : vector<1x512xf32> to vector<16x512xf32>
    %6 = arith.addf %3, %5 : vector<16x512xf32>
    %cst_5 = arith.constant 0.000000e+00 : f32
    %7 = vector.broadcast %cst_5 : f32 to vector<16x512xf32>
    %8 = arith.maximumf %6, %7 : vector<16x512xf32>
    %9 = arith.truncf %8 : vector<16x512xf32> to vector<16x512xbf16>
    %c0_6 = arith.constant 0 : index
    %c0_7 = arith.constant 0 : index
    %10 = vector.load %arg4[%c0_6, %c0_7] : memref<512x256xbf16, #tpu.memory_space<vmem>>, vector<512x256xbf16>
    %cst_8 = arith.constant dense<0.000000e+00> : vector<16x256xf32>
    %11 = tpu.matmul %9, %10, %cst_8 {dimension_numbers = #tpu.dot_dimension_numbers<[1], [0], [0], [1], [0, 0, 1, 1], [], []>} : vector<16x512xbf16>, vector<512x256xbf16>, vector<16x256xf32> -> vector<16x256xf32>
    %c0_9 = arith.constant 0 : index
    %c0_10 = arith.constant 0 : index
    %12 = vector.load %arg5[%c0_9, %c0_10] : memref<1x256xf32, #tpu.memory_space<vmem>>, vector<1x256xf32>
    %13 = vector.broadcast %12 : vector<1x256xf32> to vector<16x256xf32>
    %14 = arith.addf %11, %13 : vector<16x256xf32>
    %cst_11 = arith.constant 0.000000e+00 : f32
    %15 = vector.broadcast %cst_11 : f32 to vector<16x256xf32>
    %16 = arith.maximumf %14, %15 : vector<16x256xf32>
    %17 = arith.truncf %16 : vector<16x256xf32> to vector<16x256xbf16>
    %c0_12 = arith.constant 0 : index
    %c0_13 = arith.constant 0 : index
    %18 = vector.load %arg6[%c0_12, %c0_13] : memref<256x128xbf16, #tpu.memory_space<vmem>>, vector<256x128xbf16>
    %cst_14 = arith.constant dense<0.000000e+00> : vector<16x128xf32>
    %19 = tpu.matmul %17, %18, %cst_14 {dimension_numbers = #tpu.dot_dimension_numbers<[1], [0], [0], [1], [0, 0, 1, 1], [], []>} : vector<16x256xbf16>, vector<256x128xbf16>, vector<16x128xf32> -> vector<16x128xf32>
    %c0_15 = arith.constant 0 : index
    %c0_16 = arith.constant 0 : index
    %20 = vector.load %arg7[%c0_15, %c0_16] : memref<1x128xf32, #tpu.memory_space<vmem>>, vector<1x128xf32>
    %21 = vector.broadcast %20 : vector<1x128xf32> to vector<16x128xf32>
    %22 = arith.addf %19, %21 : vector<16x128xf32>
    %c0_17 = arith.constant 0 : index
    %c0_18 = arith.constant 0 : index
    %23 = vector.load %arg8[%c0_17, %c0_18] : memref<16x128xf32, #tpu.memory_space<vmem>>, vector<16x128xf32>
    tpu.vector_store %arg8[%c0_17, %c0_18], %22 {strides = array<i32>} : memref<16x128xf32, #tpu.memory_space<vmem>>, vector<16x128xf32>,
    return
  }
  func.func @transform_0(%arg0: i32) -> (i32, i32) {
    %c0_i32 = arith.constant 0 : i32
    %c0_i32_0 = arith.constant 0 : i32
    return %arg0, %c0_i32 : i32, i32
  }
  func.func @transform_1(%arg0: i32) -> (i32, i32) {
    %c0_i32 = arith.constant 0 : i32
    %c0_i32_0 = arith.constant 0 : i32
    %c0_i32_1 = arith.constant 0 : i32
    return %c0_i32, %c0_i32_0 : i32, i32
  }
  func.func @transform_2(%arg0: i32) -> (i32, i32) {
    %c0_i32 = arith.constant 0 : i32
    %c0_i32_0 = arith.constant 0 : i32
    %c0_i32_1 = arith.constant 0 : i32
    return %c0_i32, %c0_i32_0 : i32, i32
  }
  func.func @transform_3(%arg0: i32) -> (i32, i32) {
    %c0_i32 = arith.constant 0 : i32
    %c0_i32_0 = arith.constant 0 : i32
    %c0_i32_1 = arith.constant 0 : i32
    return %c0_i32, %c0_i32_0 : i32, i32
  }
  func.func @transform_4(%arg0: i32) -> (i32, i32) {
    %c0_i32 = arith.constant 0 : i32
    %c0_i32_0 = arith.constant 0 : i32
    %c0_i32_1 = arith.constant 0 : i32
    return %c0_i32, %c0_i32_0 : i32, i32
  }
  func.func @transform_5(%arg0: i32) -> (i32, i32) {
    %c0_i32 = arith.constant 0 : i32
    %c0_i32_0 = arith.constant 0 : i32
    %c0_i32_1 = arith.constant 0 : i32
    return %c0_i32, %c0_i32_0 : i32, i32
  }
  func.func @transform_6(%arg0: i32) -> (i32, i32) {
    %c0_i32 = arith.constant 0 : i32
    %c0_i32_0 = arith.constant 0 : i32
    %c0_i32_1 = arith.constant 0 : i32
    return %c0_i32, %c0_i32_0 : i32, i32
  }
  func.func @transform_7(%arg0: i32) -> (i32, i32) {
    %c0_i32 = arith.constant 0 : i32
    %c0_i32_0 = arith.constant 0 : i32
    return %arg0, %c0_i32 : i32, i32
  }
}

</mosaic_0001>

<bundles_post_ra>
// kernel: classifier_forward.1
= control target key start
LH: loop header
LB: loop body
LE: loop exit
PB: predicated region body
PF: predicated region fallthrough
CT: control target
= control target key end

     0   :  { %12 = vsyncpa [#allocation3], 0  ;;  %s3418_s0 = inlined_call_operand.hbm [shape: f32[6,776], index: 0, kind: input, shape index: {}]   ;;  %s3419_s1 = inlined_call_operand.hbm [shape: bf16[776,512], index: 1, kind: input, shape index: {}]   ;;  %s3420_s2 = inlined_call_operand.vmem [shape: f32[1,512], index: 2, kind: input, shape index: {}]   ;;  %s3421_s3 = inlined_call_operand.hbm [shape: bf16[512,256], index: 3, kind: input, shape index: {}]   ;;  %s3422_s4 = inlined_call_operand.vmem [shape: f32[1,256], index: 4, kind: input, shape index: {}]   ;;  %s3423_s5 = inlined_call_operand.hbm [shape: bf16[256,128], index: 5, kind: input, shape index: {}]   ;;  %s3424_s6 = inlined_call_operand.vmem [shape: f32[1,128], index: 6, kind: input, shape index: {}]   ;;  %s3425_s7 = inlined_call_operand.hbm [shape: f32[6,128], index: 7, kind: output, shape index: {}]  }
   0x1   :  { %13 = vsyncpa [#allocation6], 0 }
   0x2   :  { %14 = vsyncpa [#allocation9], 0 }
   0x3   :  { %15 = vsyncpa [#allocation4], 0 }
   0x4   :  { %20 = vsyncadd [#allocation3], 896  ;;  %s3227_s24 = smov [#allocation5]   ;;  %s3109_s28 = scalar_lea.hbm %s3419_s1, 24832 }
   0x5   :  { %s33_s25 = sshll.u32 %s3227_s24, 4  ;;  %p3110_p0 = scmp.ne.s32.totalorder %s3419_s1, %s3109_s28  ;;  %s34_s25 = int_to_ptr.vmem [resolvable:$true] %s33_s25 }
   0x6   :  { %p3113_p1 = scmp.lt.u32.totalorder %s3109_s28, %s3419_s1 }
   0x8   :  { %p3115_p2 = pnand %p3113_p1, %p3110_p0 }
   0xa   :  { %3118 = shalt.err (!%p3115_p2)
}
   0xb   :  { %s3119_s10 = scalar_lea.vmem %s34_s25, 24832  ;;  %p3124_p4 = scmp.lt.s32.totalorder %s34_s25, %s34_s25 }
   0xc   :  { %p3120_p3 = scmp.ne.s32.totalorder %s34_s25, %s3119_s10  ;;  %p3125_p5 = scmp.lt.s32.totalorder %s3119_s10, %s3119_s10 }
   0xe   :  { %p3126_p6 = por %p3125_p5, %p3124_p4 }
  0x10   :  { %p3127_p7 = pnand %p3126_p6, %p3120_p3 }
  0x12   :  { %3130 = shalt.err (!%p3127_p7)
}
  0x13   :  { %s3228_s11 = smov 256   ;;  %s3229_s12 = smov 16  }
  0x14   :  { %39 = dma.hbm_to_vmem [thread:$0]  %s3419_s1, 24832, %s34_s25, [#allocation6], %s3228_s11, %s3228_s11, %s3229_s12  }
  0x15   :  { %s3230_s15 = smov [#allocation2]   ;;  %s3131_s19 = scalar_lea.hbm %s3418_s0, 896 }
  0x16   :  { %s21_s16 = sshll.u32 %s3230_s15, 4  ;;  %p3132_p8 = scmp.ne.s32.totalorder %s3418_s0, %s3131_s19  ;;  %s22_s16 = int_to_ptr.vmem [resolvable:$true] %s21_s16 }
  0x17   :  { %p3135_p9 = scmp.lt.u32.totalorder %s3131_s19, %s3418_s0 }
  0x19   :  { %p3137_p10 = pnand %p3135_p9, %p3132_p8 }
  0x1b   :  { %3140 = shalt.err (!%p3137_p10)
}
  0x1c   :  { %s3141_s24 = scalar_lea.vmem %s22_s16, 896  ;;  %s3145_s1 = scalar_lea.vmem %s22_s16, 1792 }
  0x1d   :  { %p3142_p11 = scmp.ne.s32.totalorder %s22_s16, %s3141_s24  ;;  %p3146_p12 = scmp.lt.s32.totalorder %s22_s16, %s22_s16 }
  0x1e   :  { %p3147_p13 = scmp.lt.s32.totalorder %s3145_s1, %s3141_s24 }
  0x20   :  { %p3148_p0 = por %p3147_p13, %p3146_p12 }
  0x22   :  { %p3149_p1 = pnand %p3148_p0, %p3142_p11 }
  0x24   :  { %3152 = shalt.err (!%p3149_p1)
}
  0x25   :  { %s3231_s25 = smov 896   ;;  %s3232_s26 = smov 56  }
  0x26   :  { %27 = dma.hbm_to_vmem [thread:$0]  %s3418_s0, 896, %s22_s16, [#allocation3], %s3231_s25, %s3231_s25, %s3232_s26  }
  0x27   :  { %s3233_s29 = smov [#allocation7]   ;;  %s3153_s10 = scalar_lea.hbm %s3421_s3, 8192 }
  0x28   :  { %s47_s30 = sshll.u32 %s3233_s29, 4  ;;  %p3154_p2 = scmp.ne.s32.totalorder %s3421_s3, %s3153_s10  ;;  %s48_s30 = int_to_ptr.vmem [resolvable:$true] %s47_s30 }
  0x29   :  { %p3157_p3 = scmp.lt.u32.totalorder %s3153_s10, %s3421_s3 }
  0x2b   :  { %p3159_p4 = pnand %p3157_p3, %p3154_p2 }
  0x2d   :  { %3162 = shalt.err (!%p3159_p4)
}
  0x2e   :  { %s3163_s15 = scalar_lea.vmem %s48_s30, 8192  ;;  %p3168_p6 = scmp.lt.s32.totalorder %s48_s30, %s48_s30 }
  0x2f   :  { %p3164_p5 = scmp.ne.s32.totalorder %s48_s30, %s3163_s15  ;;  %p3169_p7 = scmp.lt.s32.totalorder %s3163_s15, %s3163_s15 }
  0x31   :  { %p3170_p8 = por %p3169_p7, %p3168_p6 }
  0x33   :  { %p3171_p9 = pnand %p3170_p8, %p3164_p5 }
  0x35   :  { %3174 = shalt.err (!%p3171_p9)
}
  0x36   :  { %s3234_s0 = smov 128   ;;  %s3235_s16 = smov 8  }
  0x37   :  { %53 = dma.hbm_to_vmem [thread:$0]  %s3421_s3, 8192, %s48_s30, [#allocation6], %s3234_s0, %s3234_s0, %s3235_s16  }
  0x38   :  { %s3236_s19 = smov [#allocation8]   ;;  %s3175_s23 = scalar_lea.hbm %s3423_s5, 2048 }
  0x39   :  { %s61_s20 = sshll.u32 %s3236_s19, 4  ;;  %p3176_p10 = scmp.ne.s32.totalorder %s3423_s5, %s3175_s23  ;;  %s62_s20 = int_to_ptr.vmem [resolvable:$true] %s61_s20 }
  0x3a   :  { %p3179_p11 = scmp.lt.u32.totalorder %s3175_s23, %s3423_s5 }
  0x3c   :  { %p3181_p12 = pnand %p3179_p11, %p3176_p10 }
  0x3e   :  { %3184 = shalt.err (!%p3181_p12)
}
  0x3f   :  { %s3185_s27 = scalar_lea.vmem %s62_s20, 2048  ;;  %p3190_p0 = scmp.lt.s32.totalorder %s62_s20, %s62_s20 }
  0x40   :  { %p3186_p13 = scmp.ne.s32.totalorder %s62_s20, %s3185_s27  ;;  %p3191_p1 = scmp.lt.s32.totalorder %s3185_s27, %s3185_s27 }
  0x42   :  { %p3192_p2 = por %p3191_p1, %p3190_p0 }
  0x44   :  { %p3193_p3 = pnand %p3192_p2, %p3186_p13 }
  0x46   :  { %3196 = shalt.err (!%p3193_p3)
}
  0x47   :  { %s3237_s3 = smov 64   ;;  %s3238_s28 = smov 4  }
  0x48   :  { %67 = dma.hbm_to_vmem [thread:$0]  %s3423_s5, 2048, %s62_s20, [#allocation9], %s3237_s3, %s3237_s3, %s3238_s28  }
  0x49   :  { %3219 = dma.done.wait [#allocation3], 1792  }
  0x4a   :  { %3220 = vsyncadd [#allocation3], 4294965504 }
  0x4b   :  { %3221 = dma.done.wait [#allocation6], 33024  }
  0x4c   :  { %3222 = vsyncadd [#allocation6], 4294934272 }
  0x4d   :  { %3223 = dma.done.wait [#allocation9], 2048  }
  0x4e   :  { %3224 = vsyncadd [#allocation9], 4294965248  ;;  %v2705_v0 = vld [vmem:[#allocation5 + $0x4] ss:$16 sps:$4 sm:$0xff]   ;;  %v2709_v2 = vld [vmem:[#allocation5] ss:$16 sps:$4 sm:$0xff]  }
  0x4f   :  { %v2707_v1 = vld [vmem:[#allocation5 + $0x204] ss:$16 sps:$4 sm:$0xff]   ;;  %1307 = vmatprep.subr.bf16.mxu1 %v2705_v0  ;;  %v2710_v3 = vld [vmem:[#allocation5 + $0x200] ss:$16 sps:$4 sm:$0xff]   ;;  %v84_v46 = vld [vmem:[#allocation2 + $0x8] sm:$0xff]  ;;  %vm1294_vm0 = vcmask 1043456  }
  0x50   :  { %1350 = vmatprep.subr.bf16.mxu0 %v2707_v1  ;;  %v2711_v4 = vld [vmem:[#allocation5 + $0x24] ss:$16 sps:$4 sm:$0xff]   ;;  %1308 = vmatpush1.bf16.msra.mxu1 %v2709_v2  ;;  %v2715_v6 = vld [vmem:[#allocation5 + $0x20] ss:$16 sps:$4 sm:$0xff]   ;;  %v86_v51 = vld [vmem:[#allocation2 + $0x18] sm:$0xff]  ;;  %vm1290_vm1 = vcmask 64512  }
  0x51   :  { %1351 = vmatpush1.bf16.msra.mxu0 %v2710_v3  ;;  %v2713_v5 = vld [vmem:[#allocation5 + $0x224] ss:$16 sps:$4 sm:$0xff]   ;;  %1309 = vmatprep.subr.bf16.mxu1 %v2711_v4  ;;  %v2716_v7 = vld [vmem:[#allocation5 + $0x220] ss:$16 sps:$4 sm:$0xff]  }
  0x52   :  { %1352 = vmatprep.subr.bf16.mxu0 %v2713_v5  ;;  %v2717_v8 = vld [vmem:[#allocation5 + $0x44] ss:$16 sps:$4 sm:$0xff]   ;;  %v2721_v10 = vld [vmem:[#allocation5 + $0x40] ss:$16 sps:$4 sm:$0xff]  }
  0x53   :  { %v2719_v9 = vld [vmem:[#allocation5 + $0x244] ss:$16 sps:$4 sm:$0xff]   ;;  %v2722_v11 = vld [vmem:[#allocation5 + $0x240] ss:$16 sps:$4 sm:$0xff]  }
  0x54   :  { %1310 = vmatpush1.bf16.msra.mxu1 %v2715_v6  ;;  %v2723_v12 = vld [vmem:[#allocation5 + $0x64] ss:$16 sps:$4 sm:$0xff]   ;;  %v2727_v14 = vld [vmem:[#allocation5 + $0x60] ss:$16 sps:$4 sm:$0xff]  }
  0x55   :  { %1353 = vmatpush1.bf16.msra.mxu0 %v2716_v7  ;;  %1311 = vmatprep.subr.bf16.mxu1 %v2717_v8  ;;  %v2725_v13 = vld [vmem:[#allocation5 + $0x264] ss:$16 sps:$4 sm:$0xff]   ;;  %v2728_v15 = vld [vmem:[#allocation5 + $0x260] ss:$16 sps:$4 sm:$0xff]   ;;  %v90_v7 = vld [vmem:[#allocation2 + $0x38] sm:$0xff] }
  0x56   :  { %1354 = vmatprep.subr.bf16.mxu0 %v2719_v9  ;;  %v2729_v16 = vld [vmem:[#allocation5 + $0x84] ss:$16 sps:$4 sm:$0xff]   ;;  %v2733_v18 = vld [vmem:[#allocation5 + $0x80] ss:$16 sps:$4 sm:$0xff]  }
  0x57   :  { %v2731_v17 = vld [vmem:[#allocation5 + $0x284] ss:$16 sps:$4 sm:$0xff]   ;;  %v2734_v19 = vld [vmem:[#allocation5 + $0x280] ss:$16 sps:$4 sm:$0xff]  }
  0x58   :  { %1312 = vmatpush1.bf16.msra.mxu1 %v2721_v10  ;;  %v2735_v20 = vld [vmem:[#allocation5 + $0xa4] ss:$16 sps:$4 sm:$0xff]   ;;  %v2739_v22 = vld [vmem:[#allocation5 + $0xa0] ss:$16 sps:$4 sm:$0xff]   ;;  %v92_v10 = vld [vmem:[#allocation2 + $0x48] sm:$0xff] }
  0x59   :  { %1355 = vmatpush1.bf16.msra.mxu0 %v2722_v11  ;;  %1313 = vmatprep.subr.bf16.mxu1 %v2723_v12  ;;  %v2737_v21 = vld [vmem:[#allocation5 + $0x2a4] ss:$16 sps:$4 sm:$0xff]   ;;  %v2740_v23 = vld [vmem:[#allocation5 + $0x2a0] ss:$16 sps:$4 sm:$0xff]   ;;  %v2806_v11 = vld [vmem:[#allocation5 + $0xc] ss:$16 sps:$4 sm:$0xff]  }
  0x5a   :  { %1356 = vmatprep.subr.bf16.mxu0 %v2725_v13  ;;  %v2741_v24 = vld [vmem:[#allocation5 + $0xc4] ss:$16 sps:$4 sm:$0xff]   ;;  %v2745_v26 = vld [vmem:[#allocation5 + $0xc0] ss:$16 sps:$4 sm:$0xff]  }
  0x5b   :  { %v2743_v25 = vld [vmem:[#allocation5 + $0x2c4] ss:$16 sps:$4 sm:$0xff]   ;;  %v2746_v27 = vld [vmem:[#allocation5 + $0x2c0] ss:$16 sps:$4 sm:$0xff]  }
  0x5c   :  { %1314 = vmatpush1.bf16.msra.mxu1 %v2727_v14  ;;  %v2747_v28 = vld [vmem:[#allocation5 + $0xe4] ss:$16 sps:$4 sm:$0xff]   ;;  %v2751_v30 = vld [vmem:[#allocation5 + $0xe0] ss:$16 sps:$4 sm:$0xff]   ;;  %v2804_v14 = vld [vmem:[#allocation5 + $0x8] ss:$16 sps:$4 sm:$0xff]  }
  0x5d   :  { %1357 = vmatpush1.bf16.msra.mxu0 %v2728_v15  ;;  %1315 = vmatprep.subr.bf16.mxu1 %v2729_v16  ;;  %v2749_v29 = vld [vmem:[#allocation5 + $0x2e4] ss:$16 sps:$4 sm:$0xff]   ;;  %v2752_v31 = vld [vmem:[#allocation5 + $0x2e0] ss:$16 sps:$4 sm:$0xff]  }
  0x5e   :  { %1358 = vmatprep.subr.bf16.mxu0 %v2731_v17  ;;  %v2753_v32 = vld [vmem:[#allocation5 + $0x104] ss:$16 sps:$4 sm:$0xff]   ;;  %v2757_v34 = vld [vmem:[#allocation5 + $0x100] ss:$16 sps:$4 sm:$0xff]   ;;  %v2812_v17 = vld [vmem:[#allocation5 + $0x2c] ss:$16 sps:$4 sm:$0xff]  }
  0x5f   :  { %v2755_v33 = vld [vmem:[#allocation5 + $0x304] ss:$16 sps:$4 sm:$0xff]   ;;  %v2758_v35 = vld [vmem:[#allocation5 + $0x300] ss:$16 sps:$4 sm:$0xff]  }
  0x60   :  { %1316 = vmatpush1.bf16.msra.mxu1 %v2733_v18  ;;  %v2759_v36 = vld [vmem:[#allocation5 + $0x124] ss:$16 sps:$4 sm:$0xff]   ;;  %v2763_v38 = vld [vmem:[#allocation5 + $0x120] ss:$16 sps:$4 sm:$0xff]  }
  0x61   :  { %1359 = vmatpush1.bf16.msra.mxu0 %v2734_v19  ;;  %1317 = vmatprep.subr.bf16.mxu1 %v2735_v20  ;;  %v2761_v37 = vld [vmem:[#allocation5 + $0x324] ss:$16 sps:$4 sm:$0xff]   ;;  %v2764_v39 = vld [vmem:[#allocation5 + $0x320] ss:$16 sps:$4 sm:$0xff]   ;;  %v2810_v19 = vld [vmem:[#allocation5 + $0x28] ss:$16 sps:$4 sm:$0xff]  }
  0x62   :  { %1360 = vmatprep.subr.bf16.mxu0 %v2737_v21  ;;  %v2765_v40 = vld [vmem:[#allocation5 + $0x144] ss:$16 sps:$4 sm:$0xff]   ;;  %v2769_v42 = vld [vmem:[#allocation5 + $0x140] ss:$16 sps:$4 sm:$0xff]   ;;  %v2818_v21 = vld [vmem:[#allocation5 + $0x4c] ss:$16 sps:$4 sm:$0xff]  }
  0x63   :  { %v2767_v41 = vld [vmem:[#allocation5 + $0x344] ss:$16 sps:$4 sm:$0xff]   ;;  %v2770_v43 = vld [vmem:[#allocation5 + $0x340] ss:$16 sps:$4 sm:$0xff]  }
  0x64   :  { %1318 = vmatpush1.bf16.msra.mxu1 %v2739_v22  ;;  %v2771_v44 = vld [vmem:[#allocation5 + $0x164] ss:$16 sps:$4 sm:$0xff]   ;;  %v2775_v47 = vld [vmem:[#allocation5 + $0x160] ss:$16 sps:$4 sm:$0xff]  }
  0x65   :  { %1361 = vmatpush1.bf16.msra.mxu0 %v2740_v23  ;;  %1319 = vmatprep.subr.bf16.mxu1 %v2741_v24  ;;  %v2773_v45 = vld [vmem:[#allocation5 + $0x364] ss:$16 sps:$4 sm:$0xff]   ;;  %v2776_v48 = vld [vmem:[#allocation5 + $0x360] ss:$16 sps:$4 sm:$0xff]   ;;  %v2816_v23 = vld [vmem:[#allocation5 + $0x48] ss:$16 sps:$4 sm:$0xff]  }
  0x66   :  { %1362 = vmatprep.subr.bf16.mxu0 %v2743_v25  ;;  %v91_v49 = vld [vmem:[#allocation2 + $0x40] sm:$0xff]  ;;  %v93_v52 = vld [vmem:[#allocation2 + $0x50] sm:$0xff]  ;;  %v2824_v25 = vld [vmem:[#allocation5 + $0x6c] ss:$16 sps:$4 sm:$0xff]  }
  0x67   :  { %v3332_v50 = vpack.c.bf16 %v91_v49, %v84_v46  ;;  %v2777_v53 = vld [vmem:[#allocation5 + $0x184] ss:$16 sps:$4 sm:$0xff]   ;;  %v3334_v55 = vpack.c.bf16 %v93_v52, %v86_v51  ;;  %v2781_v56 = vld [vmem:[#allocation5 + $0x180] ss:$16 sps:$4 sm:$0xff]   ;;  %v2846_v46 = vld [vmem:[#allocation5 + $0xe8] ss:$16 sps:$4 sm:$0xff]  }
  0x68   :  { %1320 = vmatpush1.bf16.msra.mxu1 %v2745_v26  ;;  %v2779_v54 = vld [vmem:[#allocation5 + $0x384] ss:$16 sps:$4 sm:$0xff]   ;;  %v2782_v57 = vld [vmem:[#allocation5 + $0x380] ss:$16 sps:$4 sm:$0xff]   ;;  %v2860_v52 = vld [vmem:[#allocation5 + $0x12c] ss:$16 sps:$4 sm:$0xff]  }
  0x69   :  { %1363 = vmatpush1.bf16.msra.mxu0 %v2746_v27  ;;  %1321 = vmatprep.subr.bf16.mxu1 %v2747_v28  ;;  %v2783_v58 = vld [vmem:[#allocation5 + $0x1a4] ss:$16 sps:$4 sm:$0xff]   ;;  %v2787_v60 = vld [vmem:[#allocation5 + $0x1a0] ss:$16 sps:$4 sm:$0xff]   ;;  %v2822_v27 = vld [vmem:[#allocation5 + $0x68] ss:$16 sps:$4 sm:$0xff]  }
  0x6a   :  { %1364 = vmatprep.subr.bf16.mxu0 %v2749_v29  ;;  %1339 = vmatprep.mubr.bf16.mxu1 %v3332_v50  ;;  %v2785_v59 = vld [vmem:[#allocation5 + $0x3a4] ss:$16 sps:$4 sm:$0xff]   ;;  %v2788_v61 = vld [vmem:[#allocation5 + $0x3a0] ss:$16 sps:$4 sm:$0xff]   ;;  %v2830_v29 = vld [vmem:[#allocation5 + $0x8c] ss:$16 sps:$4 sm:$0xff]  }
  0x6b   :  { %1382 = vmatprep.mubr.bf16.mxu0 %v3334_v55  ;;  %v2789_v62 = vld [vmem:[#allocation5 + $0x1c4] ss:$16 sps:$4 sm:$0xff]   ;;  %v2793_v0 = vld [vmem:[#allocation5 + $0x1c0] ss:$16 sps:$4 sm:$0xff]  }
  0x6c   :  { %1322 = vmatpush1.bf16.msra.mxu1 %v2751_v30  ;;  %v2791_v63 = vld [vmem:[#allocation5 + $0x3c4] ss:$16 sps:$4 sm:$0xff]   ;;  %v2794_v1 = vld [vmem:[#allocation5 + $0x3c0] ss:$16 sps:$4 sm:$0xff]  }
  0x6d   :  { %1365 = vmatpush1.bf16.msra.mxu0 %v2752_v31  ;;  %1323 = vmatprep.subr.bf16.mxu1 %v2753_v32  ;;  %v2795_v2 = vld [vmem:[#allocation5 + $0x1e4] ss:$16 sps:$4 sm:$0xff]   ;;  %v2799_v4 = vld [vmem:[#allocation5 + $0x1e0] ss:$16 sps:$4 sm:$0xff]   ;;  %v2828_v31 = vld [vmem:[#allocation5 + $0x88] ss:$16 sps:$4 sm:$0xff]  }
  0x6e   :  { %1366 = vmatprep.subr.bf16.mxu0 %v2755_v33  ;;  %v2797_v3 = vld [vmem:[#allocation5 + $0x3e4] ss:$16 sps:$4 sm:$0xff]   ;;  %v2800_v5 = vld [vmem:[#allocation5 + $0x3e0] ss:$16 sps:$4 sm:$0xff]   ;;  %v2836_v33 = vld [vmem:[#allocation5 + $0xac] ss:$16 sps:$4 sm:$0xff]  }
  0x6f   :  { %v83_v6 = vld [vmem:[#allocation2] sm:$0xff]  ;;  %v85_v9 = vld [vmem:[#allocation2 + $0x10] sm:$0xff] }
  0x70   :  { %1324 = vmatpush1.bf16.msra.mxu1 %v2757_v34  ;;  %v2803_v8 = vld [vmem:[#allocation5 + $0x404] ss:$16 sps:$4 sm:$0xff]   ;;  %v3338_v12 = vpack.c.bf16 %v90_v7, %v83_v6  ;;  %v2801_v13 = vld [vmem:[#allocation5 + $0x400] ss:$16 sps:$4 sm:$0xff]   ;;  %v3340_v15 = vpack.c.bf16 %v92_v10, %v85_v9  ;;  %v2882_v7 = vld [vmem:[#allocation5 + $0x1a8] ss:$16 sps:$4 sm:$0xff]  }
  0x71   :  { %1367 = vmatpush1.bf16.msra.mxu0 %v2758_v35  ;;  %1325 = vmatprep.subr.bf16.mxu1 %v2759_v36  ;;  %v2809_v16 = vld [vmem:[#allocation5 + $0x424] ss:$16 sps:$4 sm:$0xff]   ;;  %v2807_v18 = vld [vmem:[#allocation5 + $0x420] ss:$16 sps:$4 sm:$0xff]   ;;  %v2834_v35 = vld [vmem:[#allocation5 + $0xa8] ss:$16 sps:$4 sm:$0xff]  }
  0x72   :  { %1368 = vmatprep.subr.bf16.mxu0 %v2761_v37  ;;  %v2815_v20 = vld [vmem:[#allocation5 + $0x444] ss:$16 sps:$4 sm:$0xff]   ;;  %v2813_v22 = vld [vmem:[#allocation5 + $0x440] ss:$16 sps:$4 sm:$0xff]   ;;  %v2842_v37 = vld [vmem:[#allocation5 + $0xcc] ss:$16 sps:$4 sm:$0xff]  }
  0x73   :  { %v2821_v24 = vld [vmem:[#allocation5 + $0x464] ss:$16 sps:$4 sm:$0xff]   ;;  %v2819_v26 = vld [vmem:[#allocation5 + $0x460] ss:$16 sps:$4 sm:$0xff]   ;;  %v2890_v9 = vld [vmem:[#allocation5 + $0x1cc] ss:$16 sps:$4 sm:$0xff]  }
  0x74   :  { %1326 = vmatpush1.bf16.msra.mxu1 %v2763_v38  ;;  %v2827_v28 = vld [vmem:[#allocation5 + $0x484] ss:$16 sps:$4 sm:$0xff]   ;;  %v2825_v30 = vld [vmem:[#allocation5 + $0x480] ss:$16 sps:$4 sm:$0xff]  }
  0x75   :  { %1369 = vmatpush1.bf16.msra.mxu0 %v2764_v39  ;;  %1327 = vmatprep.subr.bf16.mxu1 %v2765_v40  ;;  %v2833_v32 = vld [vmem:[#allocation5 + $0x4a4] ss:$16 sps:$4 sm:$0xff]   ;;  %v2831_v34 = vld [vmem:[#allocation5 + $0x4a0] ss:$16 sps:$4 sm:$0xff]   ;;  %v2840_v39 = vld [vmem:[#allocation5 + $0xc8] ss:$16 sps:$4 sm:$0xff]  }
  0x76   :  { %1370 = vmatprep.subr.bf16.mxu0 %v2767_v41  ;;  %v2839_v36 = vld [vmem:[#allocation5 + $0x4c4] ss:$16 sps:$4 sm:$0xff]   ;;  %v2837_v38 = vld [vmem:[#allocation5 + $0x4c0] ss:$16 sps:$4 sm:$0xff]   ;;  %v88_v41 = vld [vmem:[#allocation2 + $0x28] sm:$0xff] }
  0x77   :  { %v2845_v40 = vld [vmem:[#allocation5 + $0x4e4] ss:$16 sps:$4 sm:$0xff]   ;;  %v2849_v49 = vld [vmem:[#allocation5 + $0x500] ss:$16 sps:$4 sm:$0xff]  }
  0x78   :  { %1328 = vmatpush1.bf16.msra.mxu1 %v2769_v42  ;;  %v95_v42 = vld [vmem:[#allocation2 + $0x60] sm:$0xff] }
  0x79   :  { %1371 = vmatpush1.bf16.msra.mxu0 %v2770_v43  ;;  %1329 = vmatprep.subr.bf16.mxu1 %v2771_v44  ;;  %v2848_v43 = vld [vmem:[#allocation5 + $0xec] ss:$16 sps:$4 sm:$0xff]   ;;  %v3345_v44 = vpack.c.bf16 %v95_v42, %v88_v41  ;;  %v2857_v51 = vld [vmem:[#allocation5 + $0x524] ss:$16 sps:$4 sm:$0xff]   ;;  %v2879_v6 = vld [vmem:[#allocation5 + $0x5a0] ss:$16 sps:$4 sm:$0xff]  }
  0x7a   :  { %1372 = vmatprep.subr.bf16.mxu0 %v2773_v45  ;;  %v2843_v45 = vld [vmem:[#allocation5 + $0x4e0] ss:$16 sps:$4 sm:$0xff]   ;;  %v2911_v41 = vld [vmem:[#allocation5 + $0x288] ss:$16 sps:$4 sm:$0xff]   ;;  %v2916_v42 = vld [vmem:[#allocation5 + $0x2ac] ss:$16 sps:$4 sm:$0xff]  }
  0x7b   :  { %v2885_v10 = vld [vmem:[#allocation5 + $0x5c0] ss:$16 sps:$4 sm:$0xff]  }
  0x7c   :  { %1330 = vmatpush1.bf16.msra.mxu1 %v2775_v47  ;;  %v2851_v47 = vld [vmem:[#allocation5 + $0x504] ss:$16 sps:$4 sm:$0xff]  }
  0x7d   :  { %1373 = vmatpush1.bf16.msra.mxu0 %v2776_v48  ;;  %1331 = vmatprep.subr.bf16.mxu1 %v2777_v53  ;;  %v2854_v48 = vld [vmem:[#allocation5 + $0x10c] ss:$16 sps:$4 sm:$0xff]   ;;  %v2855_v53 = vld [vmem:[#allocation5 + $0x520] ss:$16 sps:$4 sm:$0xff]  }
  0x7e   :  { %1374 = vmatprep.subr.bf16.mxu0 %v2779_v54  ;;  %v2858_v54 = vld [vmem:[#allocation5 + $0x128] ss:$16 sps:$4 sm:$0xff]  }
  0x80   :  { %1332 = vmatpush1.bf16.msra.mxu1 %v2781_v56  ;;  %v2863_v56 = vld [vmem:[#allocation5 + $0x544] ss:$16 sps:$4 sm:$0xff]  }
  0x81   :  { %1375 = vmatpush1.bf16.msra.mxu0 %v2782_v57  ;;  %1333 = vmatprep.subr.bf16.mxu1 %v2783_v58  ;;  %v2866_v57 = vld [vmem:[#allocation5 + $0x14c] ss:$16 sps:$4 sm:$0xff]   ;;  %v2861_v58 = vld [vmem:[#allocation5 + $0x540] ss:$16 sps:$4 sm:$0xff]  }
  0x82   :  { %1376 = vmatprep.subr.bf16.mxu0 %v2785_v59  ;;  %v2864_v59 = vld [vmem:[#allocation5 + $0x148] ss:$16 sps:$4 sm:$0xff]  }
  0x84   :  { %1334 = vmatpush1.bf16.msra.mxu1 %v2787_v60  ;;  %v2869_v60 = vld [vmem:[#allocation5 + $0x564] ss:$16 sps:$4 sm:$0xff]  }
  0x85   :  { %1377 = vmatpush1.bf16.msra.mxu0 %v2788_v61  ;;  %1335 = vmatprep.subr.bf16.mxu1 %v2789_v62  ;;  %v2872_v61 = vld [vmem:[#allocation5 + $0x16c] ss:$16 sps:$4 sm:$0xff]   ;;  %v2867_v62 = vld [vmem:[#allocation5 + $0x560] ss:$16 sps:$4 sm:$0xff]  }
  0x86   :  { %1378 = vmatprep.subr.bf16.mxu0 %v2791_v63  ;;  %v2870_v63 = vld [vmem:[#allocation5 + $0x168] ss:$16 sps:$4 sm:$0xff]  }
  0x88   :  { %1336 = vmatpush1.bf16.msra.mxu1 %v2793_v0  ;;  %v2875_v0 = vld [vmem:[#allocation5 + $0x584] ss:$16 sps:$4 sm:$0xff]  }
  0x89   :  { %1379 = vmatpush1.bf16.msra.mxu0 %v2794_v1  ;;  %1337 = vmatprep.subr.bf16.mxu1 %v2795_v2  ;;  %v2878_v1 = vld [vmem:[#allocation5 + $0x18c] ss:$16 sps:$4 sm:$0xff]   ;;  %v2873_v2 = vld [vmem:[#allocation5 + $0x580] ss:$16 sps:$4 sm:$0xff]  }
  0x8a   :  { %1380 = vmatprep.subr.bf16.mxu0 %v2797_v3  ;;  %v2876_v3 = vld [vmem:[#allocation5 + $0x188] ss:$16 sps:$4 sm:$0xff]  }
  0x8c   :  { %1338 = vmatpush1.bf16.msra.mxu1 %v2799_v4  ;;  %v2881_v4 = vld [vmem:[#allocation5 + $0x5a4] ss:$16 sps:$4 sm:$0xff]  }
  0x8d   :  { %1381 = vmatpush1.bf16.msra.mxu0 %v2800_v5  ;;  %1479 = vmatprep.subr.bf16.mxu1 %v2806_v11  ;;  %v2884_v5 = vld [vmem:[#allocation5 + $0x1ac] ss:$16 sps:$4 sm:$0xff]   ;;  %v2888_v11 = vld [vmem:[#allocation5 + $0x1c8] ss:$16 sps:$4 sm:$0xff]  }
  0x8e   :  { %1393 = vmatprep.subr.bf16.mxu0 %v2803_v8  ;;  %v2887_v8 = vld [vmem:[#allocation5 + $0x5c4] ss:$16 sps:$4 sm:$0xff]  }
  0x8f   :  { %1340 = vmatmul.mubr.bf16.vlgmr.msra.gmra.mrb[0].mxu1 %v3338_v12 }
  0x90   :  { %1383 = vmatmul.mubr.bf16.vlgmr.msra.gmra.mrb[0].mxu0 %v3340_v15  ;;  %1480 = vmatpush1.bf16.msra.mxu1 %v2804_v14  ;;  %v2896_v14 = vld [vmem:[#allocation5 + $0x1ec] ss:$16 sps:$4 sm:$0xff]  }
  0x91   :  { %1394 = vmatpush1.bf16.msra.mxu0 %v2801_v13  ;;  %1481 = vmatprep.subr.bf16.mxu1 %v2812_v17  ;;  %v2893_v13 = vld [vmem:[#allocation5 + $0x5e4] ss:$16 sps:$4 sm:$0xff]   ;;  %v2891_v17 = vld [vmem:[#allocation5 + $0x5e0] ss:$16 sps:$4 sm:$0xff]  }
  0x92   :  { %1395 = vmatprep.subr.bf16.mxu0 %v2809_v16  ;;  %1511 = vmatprep.mubr.bf16.mxu1 %v3332_v50  ;;  %v2852_v50 = vld [vmem:[#allocation5 + $0x108] ss:$16 sps:$4 sm:$0xff]   ;;  %v296_v16 = vld [vmem:[#allocation5 + $0x600] sm:$0xff] }
  0x93   :  { %1425 = vmatprep.mubr.bf16.mxu0 %v3345_v44 }
  0x94   :  { %1482 = vmatpush1.bf16.msra.mxu1 %v2810_v19  ;;  %v87_v19 = vld [vmem:[#allocation2 + $0x20] sm:$0xff] }
  0x95   :  { %1396 = vmatpush1.bf16.msra.mxu0 %v2807_v18  ;;  %1483 = vmatprep.subr.bf16.mxu1 %v2818_v21  ;;  %v2894_v18 = vld [vmem:[#allocation5 + $0x1e8] ss:$16 sps:$4 sm:$0xff]   ;;  %v2899_v21 = vld [vmem:[#allocation5 + $0x20c] ss:$16 sps:$4 sm:$0xff]  }
  0x96   :  { %1397 = vmatprep.subr.bf16.mxu0 %v2815_v20  ;;  %v94_v20 = vld [vmem:[#allocation2 + $0x58] sm:$0xff] }
  0x98   :  { %1484 = vmatpush1.bf16.msra.mxu1 %v2816_v23  ;;  %v2540_v23 = vcombine.low %v296_v16, %v296_v16 }
  0x99   :  { %1398 = vmatpush1.bf16.msra.mxu0 %v2813_v22  ;;  %1485 = vmatprep.subr.bf16.mxu1 %v2824_v25  ;;  %v2541_v22 = vcombine.high %v296_v16, %v296_v16  ;;  %v2897_v25 = vld [vmem:[#allocation5 + $0x208] ss:$16 sps:$4 sm:$0xff]   ;;  %v3023_v16 = vld [vmem:[#allocation7 + $0x84] ss:$8 sps:$4 sm:$0xff]  }
  0x9a   :  { %1399 = vmatprep.subr.bf16.mxu0 %v2821_v24  ;;  %v3348_v24 = vpack.c.bf16 %v94_v20, %v87_v19  ;;  %v3021_v19 = vld [vmem:[#allocation7 + $0x80] ss:$8 sps:$4 sm:$0xff]   ;;  %v3026_v20 = vld [vmem:[#allocation7 + $0x94] ss:$8 sps:$4 sm:$0xff]  }
  0x9c   :  { %1486 = vmatpush1.bf16.msra.mxu1 %v2822_v27  ;;  %v1296_v27 = vsel %vm1294_vm0, %v2540_v23, 0  ;;  %v3024_v23 = vld [vmem:[#allocation7 + $0x90] ss:$8 sps:$4 sm:$0xff]  }
  0x9d   :  { %1400 = vmatpush1.bf16.msra.mxu0 %v2819_v26  ;;  %1487 = vmatprep.subr.bf16.mxu1 %v2830_v29  ;;  %v2902_v26 = vld [vmem:[#allocation5 + $0x22c] ss:$16 sps:$4 sm:$0xff]   ;;  %v2900_v29 = vld [vmem:[#allocation5 + $0x228] ss:$16 sps:$4 sm:$0xff]  }
  0x9e   :  { %1401 = vmatprep.subr.bf16.mxu0 %v2827_v28  ;;  %v297_v28 = vld [vmem:[#allocation5 + $0x608] sm:$0xff] }
  0xa0   :  { %1488 = vmatpush1.bf16.msra.mxu1 %v2828_v31  ;;  %v2906_v31 = vld [vmem:[#allocation5 + $0x24c] ss:$16 sps:$4 sm:$0xff]  }
  0xa1   :  { %1402 = vmatpush1.bf16.msra.mxu0 %v2825_v30  ;;  %1489 = vmatprep.subr.bf16.mxu1 %v2836_v33  ;;  %v2543_v30 = vcombine.high %v297_v28, %v297_v28  ;;  %v2904_v33 = vld [vmem:[#allocation5 + $0x248] ss:$16 sps:$4 sm:$0xff]  }
  0xa2   :  { %1403 = vmatprep.subr.bf16.mxu0 %v2833_v32  ;;  %v3239_v32 = vmov 0  }
  0xa4   :  { %1490 = vmatpush1.bf16.msra.mxu1 %v2834_v35  ;;  %v96_v35 = vld [vmem:[#allocation2 + $0x68] sm:$0xff] }
  0xa5   :  { %1404 = vmatpush1.bf16.msra.mxu0 %v2831_v34  ;;  %1491 = vmatprep.subr.bf16.mxu1 %v2842_v37  ;;  %v89_v34 = vld [vmem:[#allocation2 + $0x30] sm:$0xff]  ;;  %v2908_v37 = vld [vmem:[#allocation5 + $0x268] ss:$16 sps:$4 sm:$0xff]  }
  0xa6   :  { %1405 = vmatprep.subr.bf16.mxu0 %v2839_v36  ;;  %v2910_v36 = vld [vmem:[#allocation5 + $0x26c] ss:$16 sps:$4 sm:$0xff]  }
  0xa8   :  { %1492 = vmatpush1.bf16.msra.mxu1 %v2840_v39  ;;  %v2913_v39 = vld [vmem:[#allocation5 + $0x28c] ss:$16 sps:$4 sm:$0xff]  }
  0xa9   :  { %1406 = vmatpush1.bf16.msra.mxu0 %v2837_v38  ;;  %1493 = vmatprep.subr.bf16.mxu1 %v2848_v43  ;;  %v103_v38 = vpack.c.bf16 %v96_v35, %v89_v34  ;;  %v2919_v43 = vld [vmem:[#allocation5 + $0x2cc] ss:$16 sps:$4 sm:$0xff]   ;;  %v2953_v34 = vld [vmem:[#allocation5 + $0x448] ss:$16 sps:$4 sm:$0xff]  }
  0xaa   :  { %1407 = vmatprep.subr.bf16.mxu0 %v2845_v40  ;;  %v2958_v35 = vld [vmem:[#allocation5 + $0x46c] ss:$16 sps:$4 sm:$0xff]  }
  0xac   :  { %1494 = vmatpush1.bf16.msra.mxu1 %v2846_v46  ;;  %v2922_v46 = vld [vmem:[#allocation5 + $0x2ec] ss:$16 sps:$4 sm:$0xff]  }
  0xad   :  { %1408 = vmatpush1.bf16.msra.mxu0 %v2843_v45  ;;  %1495 = vmatprep.subr.bf16.mxu1 %v2854_v48  ;;  %v2917_v45 = vld [vmem:[#allocation5 + $0x2c8] ss:$16 sps:$4 sm:$0xff]   ;;  %v2999_v48 = vld [vmem:[#allocation7 + $0x4] ss:$8 sps:$4 sm:$0xff]  }
  0xae   :  { %1409 = vmatprep.subr.bf16.mxu0 %v2851_v47  ;;  %v2997_v47 = vld [vmem:[#allocation7] ss:$8 sps:$4 sm:$0xff]  }
  0xb0   :  { %1496 = vmatpush1.bf16.msra.mxu1 %v2852_v50  ;;  %v2920_v50 = vld [vmem:[#allocation5 + $0x2e8] ss:$16 sps:$4 sm:$0xff]  }
  0xb1   :  { %1410 = vmatpush1.bf16.msra.mxu0 %v2849_v49  ;;  %1497 = vmatprep.subr.bf16.mxu1 %v2860_v52  ;;  %v3002_v49 = vld [vmem:[#allocation7 + $0x14] ss:$8 sps:$4 sm:$0xff]   ;;  %v3000_v52 = vld [vmem:[#allocation7 + $0x10] ss:$8 sps:$4 sm:$0xff]  }
  0xb2   :  { %1411 = vmatprep.subr.bf16.mxu0 %v2857_v51  ;;  %v2925_v51 = vld [vmem:[#allocation5 + $0x30c] ss:$16 sps:$4 sm:$0xff]  }
  0xb4   :  { %1498 = vmatpush1.bf16.msra.mxu1 %v2858_v54  ;;  %v2923_v54 = vld [vmem:[#allocation5 + $0x308] ss:$16 sps:$4 sm:$0xff]  }
  0xb5   :  { %1412 = vmatpush1.bf16.msra.mxu0 %v2855_v53  ;;  %1499 = vmatprep.subr.bf16.mxu1 %v2866_v57  ;;  %v3005_v53 = vld [vmem:[#allocation7 + $0x24] ss:$8 sps:$4 sm:$0xff]   ;;  %v3003_v57 = vld [vmem:[#allocation7 + $0x20] ss:$8 sps:$4 sm:$0xff]  }
  0xb6   :  { %1413 = vmatprep.subr.bf16.mxu0 %v2863_v56  ;;  %v2928_v56 = vld [vmem:[#allocation5 + $0x32c] ss:$16 sps:$4 sm:$0xff]  }
  0xb8   :  { %1500 = vmatpush1.bf16.msra.mxu1 %v2864_v59  ;;  %v3008_v59 = vld [vmem:[#allocation7 + $0x34] ss:$8 sps:$4 sm:$0xff]  }
  0xb9   :  { %1414 = vmatpush1.bf16.msra.mxu0 %v2861_v58  ;;  %1501 = vmatprep.subr.bf16.mxu1 %v2872_v61  ;;  %v2926_v58 = vld [vmem:[#allocation5 + $0x328] ss:$16 sps:$4 sm:$0xff]  }
  0xba   :  { %1415 = vmatprep.subr.bf16.mxu0 %v2869_v60  ;;  %v2931_v60 = vld [vmem:[#allocation5 + $0x34c] ss:$16 sps:$4 sm:$0xff]   ;;  %v3006_v61 = vld [vmem:[#allocation7 + $0x30] ss:$8 sps:$4 sm:$0xff]  }
  0xbc   :  { %1502 = vmatpush1.bf16.msra.mxu1 %v2870_v63  ;;  %v2929_v63 = vld [vmem:[#allocation5 + $0x348] ss:$16 sps:$4 sm:$0xff]  }
  0xbd   :  { %1416 = vmatpush1.bf16.msra.mxu0 %v2867_v62  ;;  %1503 = vmatprep.subr.bf16.mxu1 %v2878_v1  ;;  %v3011_v62 = vld [vmem:[#allocation7 + $0x44] ss:$8 sps:$4 sm:$0xff]   ;;  %v3009_v1 = vld [vmem:[#allocation7 + $0x40] ss:$8 sps:$4 sm:$0xff]  }
  0xbe   :  { %1417 = vmatprep.subr.bf16.mxu0 %v2875_v0  ;;  %v2934_v0 = vld [vmem:[#allocation5 + $0x36c] ss:$16 sps:$4 sm:$0xff]  }
  0xc0   :  { %1504 = vmatpush1.bf16.msra.mxu1 %v2876_v3  ;;  %v2932_v3 = vld [vmem:[#allocation5 + $0x368] ss:$16 sps:$4 sm:$0xff]  }
  0xc1   :  { %1418 = vmatpush1.bf16.msra.mxu0 %v2873_v2  ;;  %1505 = vmatprep.subr.bf16.mxu1 %v2884_v5  ;;  %v3014_v2 = vld [vmem:[#allocation7 + $0x54] ss:$8 sps:$4 sm:$0xff]   ;;  %v3012_v5 = vld [vmem:[#allocation7 + $0x50] ss:$8 sps:$4 sm:$0xff]  }
  0xc2   :  { %1419 = vmatprep.subr.bf16.mxu0 %v2881_v4  ;;  %v2937_v4 = vld [vmem:[#allocation5 + $0x38c] ss:$16 sps:$4 sm:$0xff]  }
  0xc4   :  { %1506 = vmatpush1.bf16.msra.mxu1 %v2882_v7  ;;  %v2935_v7 = vld [vmem:[#allocation5 + $0x388] ss:$16 sps:$4 sm:$0xff]  }
  0xc5   :  { %1420 = vmatpush1.bf16.msra.mxu0 %v2879_v6  ;;  %1507 = vmatprep.subr.bf16.mxu1 %v2890_v9  ;;  %v3017_v6 = vld [vmem:[#allocation7 + $0x64] ss:$8 sps:$4 sm:$0xff]   ;;  %v3015_v9 = vld [vmem:[#allocation7 + $0x60] ss:$8 sps:$4 sm:$0xff]  }
  0xc6   :  { %1421 = vmatprep.subr.bf16.mxu0 %v2887_v8  ;;  %v2940_v8 = vld [vmem:[#allocation5 + $0x3ac] ss:$16 sps:$4 sm:$0xff]  }
  0xc8   :  { %1508 = vmatpush1.bf16.msra.mxu1 %v2888_v11  ;;  %v2938_v11 = vld [vmem:[#allocation5 + $0x3a8] ss:$16 sps:$4 sm:$0xff]  }
  0xc9   :  { %1422 = vmatpush1.bf16.msra.mxu0 %v2885_v10  ;;  %1509 = vmatprep.subr.bf16.mxu1 %v2896_v14  ;;  %v3020_v10 = vld [vmem:[#allocation7 + $0x74] ss:$8 sps:$4 sm:$0xff]   ;;  %v3018_v14 = vld [vmem:[#allocation7 + $0x70] ss:$8 sps:$4 sm:$0xff]  }
  0xca   :  { %1423 = vmatprep.subr.bf16.mxu0 %v2893_v13  ;;  %v2943_v13 = vld [vmem:[#allocation5 + $0x3cc] ss:$16 sps:$4 sm:$0xff]  }
  0xcc   :  { %1510 = vmatpush1.bf16.msra.mxu1 %v2894_v18  ;;  %v2946_v18 = vld [vmem:[#allocation5 + $0x3ec] ss:$16 sps:$4 sm:$0xff]  }
  0xcd   :  { %1424 = vmatpush1.bf16.msra.mxu0 %v2891_v17  ;;  %1522 = vmatprep.subr.bf16.mxu1 %v2899_v21  ;;  %v2941_v17 = vld [vmem:[#allocation5 + $0x3c8] ss:$16 sps:$4 sm:$0xff]  }
  0xce   :  { %2544 = vmatprep.subr.msk.bf16.mxu0 %vm1294_vm0, %v2541_v22  ;;  %v2944_v21 = vld [vmem:[#allocation5 + $0x3e8] ss:$16 sps:$4 sm:$0xff]   ;;  %v2949_v22 = vld [vmem:[#allocation5 + $0x40c] ss:$16 sps:$4 sm:$0xff]  }
  0xcf   :  { %1512 = vmatmul.mubr.bf16.vlgmr.msra.gmra.mrb[4].mxu1 %v3338_v12  ;;  %v2542_v12 = vcombine.low %v297_v28, %v297_v28  ;;  %v3027_v28 = vld [vmem:[#allocation7 + $0xa0] ss:$8 sps:$4 sm:$0xff]  }
  0xd0   :  { %1426 = vmatmul.mubr.bf16.vlgmr.msra.gmra.mrb[0].mxu0 %v3348_v24  ;;  %1523 = vmatpush1.bf16.msra.mxu1 %v2897_v25  ;;  %v3029_v25 = vld [vmem:[#allocation7 + $0xa4] ss:$8 sps:$4 sm:$0xff]  }
  0xd1   :  { %1437 = vmatpush1.bf16.msra.mxu0 %v1296_v27  ;;  %1524 = vmatprep.subr.bf16.mxu1 %v2902_v26  ;;  %v1302_v40 = vsel %vm1294_vm0, %v2542_v12, 0  ;;  %v2947_v26 = vld [vmem:[#allocation5 + $0x408] ss:$16 sps:$4 sm:$0xff]   ;;  %v2952_v27 = vld [vmem:[#allocation5 + $0x42c] ss:$16 sps:$4 sm:$0xff]  }
  0xd2   :  { %1468 = vmatprep.mubr.bf16.mxu0 %v3239_v32  ;;  %1554 = vmatprep.mubr.bf16.mxu1 %v3334_v55  ;;  %v2914_v55 = vld [vmem:[#allocation5 + $0x2a8] ss:$16 sps:$4 sm:$0xff]   ;;  %v3038_v12 = vld [vmem:[#allocation7 + $0xd4] ss:$8 sps:$4 sm:$0xff]  }
  0xd3   :  { %2546 = vmatprep.subr.msk.bf16.mxu0 %vm1294_vm0, %v2543_v30  ;;  %v2950_v30 = vld [vmem:[#allocation5 + $0x428] ss:$16 sps:$4 sm:$0xff]  }
  0xd4   :  { %1525 = vmatpush1.bf16.msra.mxu1 %v2900_v29  ;;  %v3032_v29 = vld [vmem:[#allocation7 + $0xb4] ss:$8 sps:$4 sm:$0xff]  }
  0xd5   :  { %1526 = vmatprep.subr.bf16.mxu1 %v2906_v31  ;;  %v2955_v31 = vld [vmem:[#allocation5 + $0x44c] ss:$16 sps:$4 sm:$0xff]  }
  0xd8   :  { %1527 = vmatpush1.bf16.msra.mxu1 %v2904_v33  ;;  %v3035_v33 = vld [vmem:[#allocation7 + $0xc4] ss:$8 sps:$4 sm:$0xff]  }
  0xd9   :  { %1528 = vmatprep.subr.bf16.mxu1 %v2910_v36  ;;  %v3033_v36 = vld [vmem:[#allocation7 + $0xc0] ss:$8 sps:$4 sm:$0xff]  }
  0xdc   :  { %2545 = vmatmul.mubr.msk.bf16.vlgmr.msra.gmra.mrb[0].mxu0 %vm1290_vm1, %v103_v38  ;;  %1529 = vmatpush1.bf16.msra.mxu1 %v2908_v37  ;;  %v2961_v37 = vld [vmem:[#allocation5 + $0x48c] ss:$16 sps:$4 sm:$0xff]  }
  0xdd   :  { %1609 = vmatpush1.bf16.msra.mxu0 %v1302_v40  ;;  %1530 = vmatprep.subr.bf16.mxu1 %v2913_v39  ;;  %v2964_v39 = vld [vmem:[#allocation5 + $0x4ac] ss:$16 sps:$4 sm:$0xff]   ;;  %v2962_v40 = vld [vmem:[#allocation5 + $0x4a8] ss:$16 sps:$4 sm:$0xff]  }
  0xde   :  { %1640 = vmatprep.mubr.bf16.mxu0 %v3239_v32  ;;  %2059 = vmatprep.subr.bf16.mxu0 %v2999_v48  ;;  %v3030_v32 = vld [vmem:[#allocation7 + $0xb0] ss:$8 sps:$4 sm:$0xff]   ;;  %v3041_v48 = vld [vmem:[#allocation7 + $0xe4] ss:$8 sps:$4 sm:$0xff]  }
  0xe0   :  { %1531 = vmatpush1.bf16.msra.mxu1 %v2911_v41  ;;  %v2967_v41 = vld [vmem:[#allocation5 + $0x4cc] ss:$16 sps:$4 sm:$0xff]  }
  0xe1   :  { %1532 = vmatprep.subr.bf16.mxu1 %v2916_v42  ;;  %v2965_v42 = vld [vmem:[#allocation5 + $0x4c8] ss:$16 sps:$4 sm:$0xff]  }
  0xe4   :  { %2547 = vmatmul.mubr.msk.bf16.vlgmr.msra.gmra.mrb[4].mxu0 %vm1290_vm1, %v103_v38  ;;  %1533 = vmatpush1.bf16.msra.mxu1 %v2914_v55  ;;  %v2959_v38 = vld [vmem:[#allocation5 + $0x488] ss:$16 sps:$4 sm:$0xff]   ;;  %v2970_v55 = vld [vmem:[#allocation5 + $0x4ec] ss:$16 sps:$4 sm:$0xff]  }
  0xe5   :  { %1534 = vmatprep.subr.bf16.mxu1 %v2919_v43  ;;  %2060 = vmatpush1.bf16.msra.mxu0 %v2997_v47  ;;  %v2968_v43 = vld [vmem:[#allocation5 + $0x4e8] ss:$16 sps:$4 sm:$0xff]   ;;  %v2976_v47 = vld [vmem:[#allocation5 + $0x52c] ss:$16 sps:$4 sm:$0xff]  }
  0xe6   :  { %2061 = vmatprep.subr.bf16.mxu0 %v3002_v49  ;;  %v2974_v49 = vld [vmem:[#allocation5 + $0x528] ss:$16 sps:$4 sm:$0xff]  }
  0xe8   :  { %1535 = vmatpush1.bf16.msra.mxu1 %v2917_v45  ;;  %v2973_v45 = vld [vmem:[#allocation5 + $0x50c] ss:$16 sps:$4 sm:$0xff]  }
  0xe9   :  { %1536 = vmatprep.subr.bf16.mxu1 %v2922_v46  ;;  %2062 = vmatpush1.bf16.msra.mxu0 %v3000_v52  ;;  %v2971_v46 = vld [vmem:[#allocation5 + $0x508] ss:$16 sps:$4 sm:$0xff]   ;;  %v3044_v52 = vld [vmem:[#allocation7 + $0xf4] ss:$8 sps:$4 sm:$0xff]  }
  0xea   :  { %2063 = vmatprep.subr.bf16.mxu0 %v3005_v53  ;;  %v2977_v53 = vld [vmem:[#allocation5 + $0x548] ss:$16 sps:$4 sm:$0xff]  }
  0xec   :  { %1537 = vmatpush1.bf16.msra.mxu1 %v2920_v50  ;;  %v3039_v50 = vld [vmem:[#allocation7 + $0xe0] ss:$8 sps:$4 sm:$0xff]  }
  0xed   :  { %1538 = vmatprep.subr.bf16.mxu1 %v2925_v51  ;;  %2064 = vmatpush1.bf16.msra.mxu0 %v3003_v57  ;;  %v2979_v51 = vld [vmem:[#allocation5 + $0x54c] ss:$16 sps:$4 sm:$0xff]   ;;  %v2980_v57 = vld [vmem:[#allocation5 + $0x568] ss:$16 sps:$4 sm:$0xff]  }
  0xee   :  { %2065 = vmatprep.subr.bf16.mxu0 %v3008_v59  ;;  %v3047_v59 = vld [vmem:[#allocation7 + $0x104] ss:$8 sps:$4 sm:$0xff]  }
  0xf0   :  { %1539 = vmatpush1.bf16.msra.mxu1 %v2923_v54  ;;  %v3042_v54 = vld [vmem:[#allocation7 + $0xf0] ss:$8 sps:$4 sm:$0xff]  }
  0xf1   :  { %1540 = vmatprep.subr.bf16.mxu1 %v2928_v56  ;;  %2066 = vmatpush1.bf16.msra.mxu0 %v3006_v61  ;;  %v2982_v56 = vld [vmem:[#allocation5 + $0x56c] ss:$16 sps:$4 sm:$0xff]  }
  0xf2   :  { %2067 = vmatprep.subr.bf16.mxu0 %v3011_v62  ;;  %v2988_v61 = vld [vmem:[#allocation5 + $0x5ac] ss:$16 sps:$4 sm:$0xff]   ;;  %v2986_v62 = vld [vmem:[#allocation5 + $0x5a8] ss:$16 sps:$4 sm:$0xff]  }
  0xf4   :  { %1541 = vmatpush1.bf16.msra.mxu1 %v2926_v58  ;;  %v2985_v58 = vld [vmem:[#allocation5 + $0x58c] ss:$16 sps:$4 sm:$0xff]  }
  0xf5   :  { %1542 = vmatprep.subr.bf16.mxu1 %v2931_v60  ;;  %2068 = vmatpush1.bf16.msra.mxu0 %v3009_v1  ;;  %v2983_v60 = vld [vmem:[#allocation5 + $0x588] ss:$16 sps:$4 sm:$0xff]   ;;  %v2996_v1 = vld [vmem:[#allocation5 + $0x5ec] ss:$16 sps:$4 sm:$0xff]  }
  0xf6   :  { %2069 = vmatprep.subr.bf16.mxu0 %v3014_v2  ;;  %v2994_v2 = vld [vmem:[#allocation5 + $0x5e8] ss:$16 sps:$4 sm:$0xff]  }
  0xf8   :  { %1543 = vmatpush1.bf16.msra.mxu1 %v2929_v63  ;;  %v2991_v63 = vld [vmem:[#allocation5 + $0x5cc] ss:$16 sps:$4 sm:$0xff]  }
  0xf9   :  { %1544 = vmatprep.subr.bf16.mxu1 %v2934_v0  ;;  %2070 = vmatpush1.bf16.msra.mxu0 %v3012_v5  ;;  %v2989_v0 = vld [vmem:[#allocation5 + $0x5c8] ss:$16 sps:$4 sm:$0xff]  }
  0xfa   :  { %2071 = vmatprep.subr.bf16.mxu0 %v3017_v6 }
  0xfc   :  { %1545 = vmatpush1.bf16.msra.mxu1 %v2932_v3 }
  0xfd   :  { %1546 = vmatprep.subr.bf16.mxu1 %v2937_v4  ;;  %2072 = vmatpush1.bf16.msra.mxu0 %v3015_v9 }
  0xfe   :  { %2073 = vmatprep.subr.bf16.mxu0 %v3020_v10  ;;  %v3368_v10 = vld [vmem:[%s3420_s2] sm:$0xf] }
 0x100   :  { %1547 = vmatpush1.bf16.msra.mxu1 %v2935_v7  ;;  %v300_v7 = vlaneseq }
 0x101   :  { %1548 = vmatprep.subr.bf16.mxu1 %v2940_v8  ;;  %2074 = vmatpush1.bf16.msra.mxu0 %v3018_v14 }
 0x102   :  { %2075 = vmatprep.subr.bf16.mxu0 %v3023_v16  ;;  %v3362_v8 = vshrl.u32 %v300_v7, 7  ;;  %v3081_v7 = vld [vmem:[#allocation7 + $0x1c0] ss:$8 sps:$4 sm:$0xff]  }
 0x104   :  { %1549 = vmatpush1.bf16.msra.mxu1 %v2938_v11  ;;  %v302_v9 = vsub.s32 0, %v3362_v8  ;;  %v306_v11 = vsub.s32 1, %v3362_v8 }
 0x105   :  { %1550 = vmatprep.subr.bf16.mxu1 %v2943_v13  ;;  %2076 = vmatpush1.bf16.msra.mxu0 %v3021_v19 }
 0x106   :  { %2077 = vmatprep.subr.bf16.mxu0 %v3026_v20  ;;  %v307_v13 = vrot.slane %v3368_v10, %v306_v11 }
 0x108   :  { %1551 = vmatpush1.bf16.msra.mxu1 %v2941_v17 }
 0x109   :  { %1552 = vmatprep.subr.bf16.mxu1 %v2946_v18  ;;  %2078 = vmatpush1.bf16.msra.mxu0 %v3024_v23  ;;  %v3095_v23 = vld [vmem:[#allocation8 + $0x48] sm:$0xff]  }
 0x10a   :  { %2079 = vmatprep.subr.bf16.mxu0 %v3029_v25 }
 0x10c   :  { %1553 = vmatpush1.bf16.msra.mxu1 %v2944_v21  ;;  %v3093_v21 = vld [vmem:[#allocation8 + $0x40] sm:$0xff]  }
 0x10d   :  { %1565 = vmatprep.subr.bf16.mxu1 %v2949_v22  ;;  %2080 = vmatpush1.bf16.msra.mxu0 %v3027_v28  ;;  %v3094_v22 = vld [vmem:[#allocation8] sm:$0xff]  }
 0x10e   :  { %2081 = vmatprep.subr.bf16.mxu0 %v3032_v29 }
 0x10f   :  { %1555 = vmatmul.mubr.bf16.vlgmr.msra.gmra.mrb[4].mxu1 %v3340_v15  ;;  %v2956_v15 = vld [vmem:[#allocation5 + $0x468] ss:$16 sps:$4 sm:$0xff]  }
 0x110   :  { %1566 = vmatpush1.bf16.msra.mxu1 %v2947_v26  ;;  %1597 = vmatprep.mubr.bf16.mxu1 %v3345_v44  ;;  %v3036_v44 = vld [vmem:[#allocation7 + $0xd0] ss:$8 sps:$4 sm:$0xff]  }
 0x111   :  { %1567 = vmatprep.subr.bf16.mxu1 %v2952_v27  ;;  %2082 = vmatpush1.bf16.msra.mxu0 %v3030_v32 }
 0x112   :  { %2083 = vmatprep.subr.bf16.mxu0 %v3035_v33 }
 0x114   :  { %1568 = vmatpush1.bf16.msra.mxu1 %v2950_v30 }
 0x115   :  { %1569 = vmatprep.subr.bf16.mxu1 %v2955_v31  ;;  %2084 = vmatpush1.bf16.msra.mxu0 %v3033_v36  ;;  %v3096_v31 = vld [vmem:[#allocation8 + $0x8] sm:$0xff]  }
 0x116   :  { %2085 = vmatprep.subr.bf16.mxu0 %v3038_v12 }
 0x118   :  { %1570 = vmatpush1.bf16.msra.mxu1 %v2953_v34  ;;  %v3097_v34 = vld [vmem:[#allocation8 + $0x50] sm:$0xff]  }
 0x119   :  { %1571 = vmatprep.subr.bf16.mxu1 %v2958_v35  ;;  %2086 = vmatpush1.bf16.msra.mxu0 %v3036_v44 }
 0x11a   :  { %2087 = vmatprep.subr.bf16.mxu0 %v3041_v48  ;;  %v3051_v48 = vld [vmem:[#allocation7 + $0x120] ss:$8 sps:$4 sm:$0xff]  }
 0x11c   :  { %1572 = vmatpush1.bf16.msra.mxu1 %v2956_v15 }
 0x11d   :  { %1573 = vmatprep.subr.bf16.mxu1 %v2961_v37  ;;  %2088 = vmatpush1.bf16.msra.mxu0 %v3039_v50  ;;  %v3045_v37 = vld [vmem:[#allocation7 + $0x100] ss:$8 sps:$4 sm:$0xff]   ;;  %v3056_v50 = vld [vmem:[#allocation7 + $0x134] ss:$8 sps:$4 sm:$0xff]  }
 0x11e   :  { %2089 = vmatprep.subr.bf16.mxu0 %v3044_v52  ;;  %v3054_v52 = vld [vmem:[#allocation7 + $0x130] ss:$8 sps:$4 sm:$0xff]  }
 0x120   :  { %1574 = vmatpush1.bf16.msra.mxu1 %v2959_v38  ;;  %v3098_v38 = vld [vmem:[#allocation8 + $0x10] sm:$0xff]  }
 0x121   :  { %1575 = vmatprep.subr.bf16.mxu1 %v2964_v39  ;;  %2090 = vmatpush1.bf16.msra.mxu0 %v3042_v54  ;;  %v3050_v39 = vld [vmem:[#allocation7 + $0x114] ss:$8 sps:$4 sm:$0xff]   ;;  %v3057_v54 = vld [vmem:[#allocation7 + $0x140] ss:$8 sps:$4 sm:$0xff]  }
 0x122   :  { %2102 = vmatprep.subr.bf16.mxu0 %v3047_v59  ;;  %v3063_v59 = vld [vmem:[#allocation7 + $0x160] ss:$8 sps:$4 sm:$0xff]  }
 0x124   :  { %1576 = vmatpush1.bf16.msra.mxu1 %v2962_v40 }
 0x125   :  { %1577 = vmatprep.subr.bf16.mxu1 %v2967_v41  ;;  %v3099_v41 = vld [vmem:[#allocation8 + $0x58] sm:$0xff]  }
 0x128   :  { %1578 = vmatpush1.bf16.msra.mxu1 %v2965_v42 }
 0x129   :  { %1579 = vmatprep.subr.bf16.mxu1 %v2970_v55 }
 0x12c   :  { %1580 = vmatpush1.bf16.msra.mxu1 %v2968_v43  ;;  %v3048_v43 = vld [vmem:[#allocation7 + $0x110] ss:$8 sps:$4 sm:$0xff]  }
 0x12d   :  { %1581 = vmatprep.subr.bf16.mxu1 %v2973_v45  ;;  %v3100_v45 = vld [vmem:[#allocation8 + $0x18] sm:$0xff]  }
 0x130   :  { %1582 = vmatpush1.bf16.msra.mxu1 %v2971_v46  ;;  %v3053_v46 = vld [vmem:[#allocation7 + $0x124] ss:$8 sps:$4 sm:$0xff]  }
 0x131   :  { %1583 = vmatprep.subr.bf16.mxu1 %v2976_v47  ;;  %v3101_v47 = vld [vmem:[#allocation8 + $0x60] sm:$0xff]  }
 0x134   :  { %1584 = vmatpush1.bf16.msra.mxu1 %v2974_v49  ;;  %v3102_v49 = vld [vmem:[#allocation8 + $0x20] sm:$0xff]  }
 0x135   :  { %1585 = vmatprep.subr.bf16.mxu1 %v2979_v51  ;;  %v3103_v51 = vld [vmem:[#allocation8 + $0x68] sm:$0xff]  }
 0x138   :  { %1586 = vmatpush1.bf16.msra.mxu1 %v2977_v53  ;;  %v3059_v53 = vld [vmem:[#allocation7 + $0x144] ss:$8 sps:$4 sm:$0xff]  }
 0x139   :  { %1587 = vmatprep.subr.bf16.mxu1 %v2982_v56  ;;  %v3062_v56 = vld [vmem:[#allocation7 + $0x154] ss:$8 sps:$4 sm:$0xff]  }
 0x13c   :  { %1588 = vmatpush1.bf16.msra.mxu1 %v2980_v57  ;;  %v3060_v57 = vld [vmem:[#allocation7 + $0x150] ss:$8 sps:$4 sm:$0xff]  }
 0x13d   :  { %1589 = vmatprep.subr.bf16.mxu1 %v2985_v58  ;;  %v3065_v58 = vld [vmem:[#allocation7 + $0x164] ss:$8 sps:$4 sm:$0xff]  }
 0x140   :  { %1590 = vmatpush1.bf16.msra.mxu1 %v2983_v60  ;;  %v3068_v60 = vld [vmem:[#allocation7 + $0x174] ss:$8 sps:$4 sm:$0xff]  }
 0x141   :  { %1591 = vmatprep.subr.bf16.mxu1 %v2988_v61  ;;  %v3066_v61 = vld [vmem:[#allocation7 + $0x170] ss:$8 sps:$4 sm:$0xff]  }
 0x144   :  { %1592 = vmatpush1.bf16.msra.mxu1 %v2986_v62  ;;  %v3071_v62 = vld [vmem:[#allocation7 + $0x184] ss:$8 sps:$4 sm:$0xff]  }
 0x145   :  { %1593 = vmatprep.subr.bf16.mxu1 %v2991_v63  ;;  %v3069_v63 = vld [vmem:[#allocation7 + $0x180] ss:$8 sps:$4 sm:$0xff]  }
 0x148   :  { %1594 = vmatpush1.bf16.msra.mxu1 %v2989_v0  ;;  %v3074_v0 = vld [vmem:[#allocation7 + $0x194] ss:$8 sps:$4 sm:$0xff]  }
 0x149   :  { %1595 = vmatprep.subr.bf16.mxu1 %v2996_v1  ;;  %v3072_v1 = vld [vmem:[#allocation7 + $0x190] ss:$8 sps:$4 sm:$0xff]  }
 0x14c   :  { %1596 = vmatpush1.bf16.msra.mxu1 %v2994_v2  ;;  %v3077_v2 = vld [vmem:[#allocation7 + $0x1a4] ss:$8 sps:$4 sm:$0xff]  }
 0x14d   :  { %2629 = vmatprep.subr.bf16.mxu1 %v3093_v21 }
 0x14f   :  { %1598 = vmatmul.mubr.bf16.vlgmr.msra.gmra.mrb[4].mxu1 %v3348_v24  ;;  %v303_v24 = vrot.slane %v3368_v10, %v302_v9 }
 0x150   :  { %2630 = vmatpush3.bf16.msra.mxu1 %v3094_v22 }
 0x151   :  { %2631 = vmatprep.subr.bf16.mxu1 %v3095_v23 }
 0x154   :  { %2632 = vmatpush3.bf16.msra.mxu1 %v3096_v31 }
 0x155   :  { %2633 = vmatprep.subr.bf16.mxu1 %v3097_v34 }
 0x158   :  { %2634 = vmatpush3.bf16.msra.mxu1 %v3098_v38 }
 0x159   :  { %2635 = vmatprep.subr.bf16.mxu1 %v3099_v41  ;;  %v3106_v41 = vld [vmem:[#allocation8 + $0x30] sm:$0xff]  }
 0x15c   :  { %2636 = vmatpush3.bf16.msra.mxu1 %v3100_v45 }
 0x15d   :  { %2637 = vmatprep.subr.bf16.mxu1 %v3101_v47 }
 0x160   :  { %2638 = vmatpush3.bf16.msra.mxu1 %v3102_v49 }
 0x161   :  { %2639 = vmatprep.subr.bf16.mxu1 %v3103_v51 }
 0x162   :  { %v1341_v3 = vpop.f32.mrb[0].mxu1 }
 0x163   :  { %v1343_v4 = vpop.f32.mrb[1].mxu1  ;;  %v1342_v14 = vadd.f32 %v1341_v3, %v303_v24  ;;  %v3075_v3 = vld [vmem:[#allocation7 + $0x1a0] ss:$8 sps:$4 sm:$0xff]  }
 0x164   :  { %v1345_v5 = vpop.f32.mrb[2].mxu1  ;;  %v1344_v16 = vadd.f32 %v1343_v4, %v307_v13  ;;  %v3080_v4 = vld [vmem:[#allocation7 + $0x1b4] ss:$8 sps:$4 sm:$0xff]  }
 0x165   :  { %v1347_v6 = vpop.f32.mrb[3].mxu1  ;;  %v1346_v18 = vadd.f32 %v1345_v5, %v303_v24  ;;  %v3078_v5 = vld [vmem:[#allocation7 + $0x1b0] ss:$8 sps:$4 sm:$0xff]   ;;  %v3086_v24 = vld [vmem:[#allocation7 + $0x1d4] ss:$8 sps:$4 sm:$0xff]  }
 0x166   :  { %v1348_v25 = vadd.f32 %v1347_v6, %v307_v13  ;;  %v3083_v6 = vld [vmem:[#allocation7 + $0x1c4] ss:$8 sps:$4 sm:$0xff]   ;;  %v3084_v13 = vld [vmem:[#allocation7 + $0x1d0] ss:$8 sps:$4 sm:$0xff]  }
 0x1af   :  { %v1470_v17 = vpop.f32.mrb[0].mxu0 }
 0x1b0   :  { %v2652_v19 = vadd.f32 %v1470_v17, %v1342_v14  ;;  %v1472_v20 = vpop.f32.mrb[1].mxu0  ;;  %v3089_v14 = vld [vmem:[#allocation7 + $0x1e4] ss:$8 sps:$4 sm:$0xff]   ;;  %v3092_v17 = vld [vmem:[#allocation7 + $0x1f4] ss:$8 sps:$4 sm:$0xff]  }
 0x1b1   :  { %v2654_v26 = vadd.f32 %v1472_v20, %v1344_v16  ;;  %v1474_v27 = vpop.f32.mrb[2].mxu0  ;;  %v3087_v16 = vld [vmem:[#allocation7 + $0x1e0] ss:$8 sps:$4 sm:$0xff]   ;;  %v314_v20 = vsub.s32 3, %v3362_v8 }
 0x1b2   :  { %v2656_v28 = vadd.f32 %v1474_v27, %v1346_v18  ;;  %v1476_v29 = vpop.f32.mrb[3].mxu0  ;;  %v1651_v32 = vmax.f32 %v2652_v19, 0.0  ;;  %v3090_v18 = vld [vmem:[#allocation7 + $0x1f0] ss:$8 sps:$4 sm:$0xff]   ;;  %v310_v19 = vsub.s32 2, %v3362_v8 }
 0x1b3   :  { %v2658_v30 = vadd.f32 %v1476_v29, %v1348_v25  ;;  %v1652_v35 = vmax.f32 %v2654_v26, 0.0  ;;  %v315_v22 = vrot.slane %v3368_v10, %v314_v20  ;;  %v2612_v8 = vld [vmem:[%s3424_s6] ss:$0 sm:$0xff] }
 0x1b4   :  { %v1655_v33 = vmax.f32 %v2656_v28, 0.0  ;;  %v311_v21 = vrot.slane %v3368_v10, %v310_v19 }
 0x1b5   :  { %v1656_v36 = vmax.f32 %v2658_v30, 0.0 }
 0x1b6   :  { %v1659_v12 = vpack.c.bf16 %v1655_v33, %v1651_v32 }
 0x1b7   :  { %v1660_v15 = vpack.c.bf16 %v1656_v36, %v1652_v35  ;;  %v3377_v44 = vpop.f32.mrb[4].mxu0 }
 0x1b8   :  { %v3379_v40 = vpop.f32.mrb[5].mxu0 }
 0x1b9   :  { %2091 = vmatprep.mubr.bf16.mxu0 %v1660_v15  ;;  %v3381_v42 = vpop.f32.mrb[6].mxu0 }
 0x1ba   :  { %2092 = vmatmul.mubr.bf16.vlgmr.msra.gmra.mrb[8].mxu0 %v1659_v12  ;;  %v3383_v55 = vpop.f32.mrb[7].mxu0 }
 0x1bb   :  { %2103 = vmatpush1.bf16.msra.mxu0 %v3045_v37 }
 0x1bc   :  { %2104 = vmatprep.subr.bf16.mxu0 %v3050_v39  ;;  %v3104_v39 = vld [vmem:[#allocation8 + $0x28] sm:$0xff]  }
 0x1bd   :  { %2640 = vmatpush3.bf16.msra.mxu1 %v3104_v39 }
 0x1bf   :  { %2105 = vmatpush1.bf16.msra.mxu0 %v3048_v43  ;;  %v3108_v43 = vld [vmem:[#allocation8 + $0x38] sm:$0xff]  }
 0x1c0   :  { %2106 = vmatprep.subr.bf16.mxu0 %v3053_v46 }
 0x1c3   :  { %2107 = vmatpush1.bf16.msra.mxu0 %v3051_v48 }
 0x1c4   :  { %2108 = vmatprep.subr.bf16.mxu0 %v3056_v50 }
 0x1c7   :  { %2109 = vmatpush1.bf16.msra.mxu0 %v3054_v52 }
 0x1c8   :  { %2110 = vmatprep.subr.bf16.mxu0 %v3059_v53 }
 0x1cb   :  { %2111 = vmatpush1.bf16.msra.mxu0 %v3057_v54 }
 0x1cc   :  { %2112 = vmatprep.subr.bf16.mxu0 %v3062_v56 }
 0x1cf   :  { %2113 = vmatpush1.bf16.msra.mxu0 %v3060_v57 }
 0x1d0   :  { %2114 = vmatprep.subr.bf16.mxu0 %v3065_v58 }
 0x1d3   :  { %2115 = vmatpush1.bf16.msra.mxu0 %v3063_v59 }
 0x1d4   :  { %2116 = vmatprep.subr.bf16.mxu0 %v3068_v60 }
 0x1d7   :  { %2117 = vmatpush1.bf16.msra.mxu0 %v3066_v61 }
 0x1d8   :  { %2118 = vmatprep.subr.bf16.mxu0 %v3071_v62 }
 0x1db   :  { %2119 = vmatpush1.bf16.msra.mxu0 %v3069_v63 }
 0x1dc   :  { %2120 = vmatprep.subr.bf16.mxu0 %v3074_v0 }
 0x1df   :  { %2121 = vmatpush1.bf16.msra.mxu0 %v3072_v1 }
 0x1e0   :  { %2122 = vmatprep.subr.bf16.mxu0 %v3077_v2 }
 0x1e3   :  { %2123 = vmatpush1.bf16.msra.mxu0 %v3075_v3 }
 0x1e4   :  { %2124 = vmatprep.subr.bf16.mxu0 %v3080_v4 }
 0x1e7   :  { %2125 = vmatpush1.bf16.msra.mxu0 %v3078_v5 }
 0x1e8   :  { %2126 = vmatprep.subr.bf16.mxu0 %v3083_v6 }
 0x1eb   :  { %2127 = vmatpush1.bf16.msra.mxu0 %v3081_v7 }
 0x1ec   :  { %2128 = vmatprep.subr.bf16.mxu0 %v3086_v24 }
 0x1ef   :  { %2129 = vmatpush1.bf16.msra.mxu0 %v3084_v13 }
 0x1f0   :  { %2130 = vmatprep.subr.bf16.mxu0 %v3089_v14 }
 0x1f3   :  { %2131 = vmatpush1.bf16.msra.mxu0 %v3087_v16 }
 0x1f4   :  { %2132 = vmatprep.subr.bf16.mxu0 %v3092_v17 }
 0x1f7   :  { %2133 = vmatpush1.bf16.msra.mxu0 %v3090_v18 }
 0x222   :  { %v1599_v23 = vpop.f32.mrb[4].mxu1 }
 0x223   :  { %v2659_v25 = vadd.f32 %v1599_v23, %v311_v21  ;;  %v1601_v26 = vpop.f32.mrb[5].mxu1 }
 0x224   :  { %v2661_v27 = vadd.f32 %v1601_v26, %v315_v22  ;;  %v1603_v28 = vpop.f32.mrb[6].mxu1 }
 0x225   :  { %v2660_v29 = vadd.f32 %v2659_v25, %v3377_v44  ;;  %v2663_v30 = vadd.f32 %v1603_v28, %v311_v21  ;;  %v1605_v31 = vpop.f32.mrb[7].mxu1  ;;  %v3105_v44 = vld [vmem:[#allocation8 + $0x70] sm:$0xff]  }
 0x226   :  { %v2662_v32 = vadd.f32 %v2661_v27, %v3379_v40  ;;  %v2665_v33 = vadd.f32 %v1605_v31, %v315_v22  ;;  %2641 = vmatprep.subr.bf16.mxu1 %v3105_v44  ;;  %v3107_v40 = vld [vmem:[#allocation8 + $0x78] sm:$0xff]  }
 0x227   :  { %v2664_v34 = vadd.f32 %v2663_v30, %v3381_v42  ;;  %v1653_v36 = vmax.f32 %v2660_v29, 0.0  ;;  %2642 = vmatpush3.bf16.msra.mxu1 %v3106_v41  ;;  %v1727_v42 = vld [vmem:[%s3422_s4] sm:$0x3] }
 0x228   :  { %v2666_v35 = vadd.f32 %v2665_v33, %v3383_v55  ;;  %v1654_v15 = vmax.f32 %v2662_v32, 0.0  ;;  %2643 = vmatprep.subr.bf16.mxu1 %v3107_v40  ;;  %v1732_v55 = vrot.slane %v1727_v42, %v302_v9  ;;  %v1736_v45 = vrot.slane %v1727_v42, %v306_v11 }
 0x229   :  { %v1657_v12 = vmax.f32 %v2664_v34, 0.0 }
 0x22a   :  { %v1658_v10 = vmax.f32 %v2666_v35, 0.0 }
 0x22b   :  { %v1661_v37 = vpack.c.bf16 %v1657_v12, %v1653_v36  ;;  %2644 = vmatpush3.bf16.msra.mxu1 %v3108_v43 }
 0x22c   :  { %v1662_v38 = vpack.c.bf16 %v1658_v10, %v1654_v15 }
 0x22e   :  { %2134 = vmatprep.mubr.bf16.mxu0 %v1662_v38 }
 0x22f   :  { %2135 = vmatmul.mubr.bf16.vlgmr.msra.gmra.mrb[8].mxu0 %v1661_v37 }
 0x302   :  { %v2136_v46 = vpop.f32.mrb[8].mxu0 }
 0x303   :  { %v2667_v47 = vadd.f32 %v2136_v46, %v1732_v55  ;;  %v2138_v48 = vpop.f32.mrb[9].mxu0 }
 0x304   :  { %v2668_v49 = vadd.f32 %v2138_v48, %v1736_v45  ;;  %v2140_v50 = vpop.f32.mrb[10].mxu0 }
 0x305   :  { %v2669_v51 = vadd.f32 %v2140_v50, %v1732_v55  ;;  %v2142_v52 = vpop.f32.mrb[11].mxu0  ;;  %v2145_v54 = vmax.f32 %v2667_v47, 0.0 }
 0x306   :  { %v2670_v53 = vadd.f32 %v2142_v52, %v1736_v45  ;;  %v2146_v57 = vmax.f32 %v2668_v49, 0.0 }
 0x307   :  { %v2147_v56 = vmax.f32 %v2669_v51, 0.0 }
 0x308   :  { %v2148_v58 = vmax.f32 %v2670_v53, 0.0 }
 0x309   :  { %v2149_v59 = vpack.c.bf16 %v2147_v56, %v2145_v54 }
 0x30a   :  { %v2150_v60 = vpack.c.bf16 %v2148_v58, %v2146_v57 }
 0x30c   :  { %2318 = vmatprep.mubr.bf16.mxu1 %v2150_v60 }
 0x30d   :  { %2319 = vmatmul.mubr.bf16.vlgmr.msra.gmra.mrb[8].mxu1 %v2149_v59 }
 0x3e0   :  { %v2645_v9 = vpop.f32.mrb[8].mxu1 }
 0x3e1   :  { %v2646_v11 = vpop.f32.mrb[9].mxu1 }
 0x3e2   :  { %v2647_v61 = vadd.f32 %v2646_v11, %v2645_v9  ;;  %v2648_v62 = vpop.f32.mrb[10].mxu1 }
 0x3e3   :  { %v2649_v63 = vpop.f32.mrb[11].mxu1 }
 0x3e4   :  { %v2321_v0 = vadd.f32 %v2647_v61, %v2612_v8  ;;  %v2650_v1 = vadd.f32 %v2649_v63, %v2648_v62 }
 0x3e6   :  { %2327 = vst [vmem:[#allocation10] sm:$0xff] %v2321_v0  ;;  %v2324_v2 = vadd.f32 %v2650_v1, %v2612_v8 }
 0x3e8   :  { %2328 = vst [vmem:[#allocation10 + $0x8] sm:$0xff] %v2324_v2 }
 0x3e9   :  { %2333 = vsyncadd [#allocation4], 128  ;;  %s3240_s11 = smov [#allocation10]  }
 0x3ea   :  { %s2334_s12 = sshll.u32 %s3240_s11, 4  ;;  %s2335_s12 = int_to_ptr.vmem [resolvable:$true] %s2334_s12 }
 0x3eb   :  { %s3197_s13 = scalar_lea.vmem %s2335_s12, 128  ;;  %s3201_s14 = scalar_lea.vmem %s2335_s12, 256 }
 0x3ec   :  { %p3198_p4 = scmp.ne.s32.totalorder %s2335_s12, %s3197_s13  ;;  %p3202_p5 = scmp.lt.s32.totalorder %s2335_s12, %s2335_s12 }
 0x3ed   :  { %p3203_p6 = scmp.lt.s32.totalorder %s3201_s14, %s3197_s13 }
 0x3ef   :  { %p3204_p7 = por %p3203_p6, %p3202_p5 }
 0x3f1   :  { %p3205_p8 = pnand %p3204_p7, %p3198_p4 }
 0x3f3   :  { %3208 = shalt.err (!%p3205_p8)
}
 0x3f4   :  { %s3209_s17 = scalar_lea.hbm %s3425_s7, 128 }
 0x3f5   :  { %p3210_p9 = scmp.ne.s32.totalorder %s3425_s7, %s3209_s17  ;;  %p3213_p10 = scmp.lt.u32.totalorder %s3209_s17, %s3425_s7 }
 0x3f7   :  { %p3215_p11 = pnand %p3213_p10, %p3210_p9 }
 0x3f9   :  { %3218 = shalt.err (!%p3215_p11)
}
 0x3fa   :  { %2340 = dma.vmem_to_hbm [thread:$0]  %s2335_s12, 128, %s3425_s7, [#allocation4], %s3234_s0, %s3234_s0, %s3235_s16  }
 0x3fb   :  { %3225 = dma.done.wait [#allocation4], 256  }
 0x3fc   :  { %3226 = vsyncadd [#allocation4], 4294967040 }
 0x3fd   :  { %2344 = vsyncpa [#allocation3], 1 }
 0x3fe   :  { %2345 = vsyncpa [#allocation6], 1 }
 0x3ff   :  { %2346 = vsyncpa [#allocation9], 1 }
 0x400   :  { %2347 = vsyncpa [#allocation4], 1 }

</bundles_post_ra>
